<compile_context>
chip_gen: v7x
topology: tpu7x:2x2x1
jax: 0.10.0
libtpu: 0.0.40
codegen_flags: <defaults>
</compile_context>

<pallas_src>
import functools

import jax
import jax.numpy as jnp
from jax.experimental import pallas as pl
from jax.experimental.pallas import tpu as pltpu

KERNEL_SET = (1, 2, 3, 5)
MAX_K = KERNEL_SET[-1]          # 5 taps in the packed per-tap weight

# Explicit scoped-VMEM limit: > v5e's 16 MiB default, well under v7x's
# 64 MiB physical per-TensorCore VMEM (review: do NOT reuse a 96 MiB v6e
# budget on v7x).
_VMEM_LIMIT_BYTES = 48 << 20


def _round_up(x, m):
    return (x + m - 1) // m * m


def _dilated_inception_kernel(x_ref, w_ref, b_ref, o_ref, *, dilation, wout_p):
    # x_ref: (TR, Wp, cin)        bf16 rows (one row = one (b, h) pair)
    # w_ref: (5, cin, cout)       bf16 per-tap packed weight blocks
    # b_ref: (cout, 1)            f32 concatenated bias (column vector)
    # o_ref: (cout, TR*Woutp)     bf16 transposed (lane-dense) output block
    tr = x_ref.shape[0]
    cin = x_ref.shape[2]
    m = tr * wout_p

    acc = None
    for t in range(MAX_K):
        off = dilation * t                      # static offset
        # Read the tap slice directly from the ref (no full-x materialization).
        xt = x_ref[:, off:off + wout_p, :].reshape(m, cin)
        d = jnp.dot(xt, w_ref[t], preferred_element_type=jnp.float32)
        acc = d if acc is None else acc + d     # (m, cout) f32

    # Transpose once so the store is lane-dense (last dim = m, a multiple of
    # 128); bias is added in the dense orientation.
    out = acc.T + b_ref[...]                    # (cout, m) f32
    o_ref[...] = out.astype(o_ref.dtype)


def _choose_row_tile(r, w_p, wout_p, cin, cout,
                     in_itemsize=2, out_itemsize=2,
                     vmem_budget_bytes=20 << 20):
    """Rows ((b, h) pairs) per grid step.

    Uses the *physical* (lane/sublane padded) VMEM footprint: cin/cout are
    padded to 128 lanes in the input block, im2col slices and f32 accumulator;
    second-minor dims pad to the sublane packing.  Prefers a tile that divides
    R (no row-pad copy) and keeps >= 2 grid steps so both v7x TensorCores /
    v6e megacore halves get work.
    """
    cin_l = _round_up(cin, 128)                       # input / slice lanes
    cout_l = _round_up(cout, 128)                     # f32 accumulator lanes
    cout_s = _round_up(cout, 32 // out_itemsize)      # out-block sublanes
    per_row = (
        2 * _round_up(w_p, 16) * cin_l * in_itemsize  # x block, double-buffered
        + 2 * cout_s * wout_p * out_itemsize          # out block, double-buffered
        + 2 * wout_p * cin_l * in_itemsize            # per-tap im2col slice temps
        + 2 * wout_p * cout_l * 4                     # f32 accumulator (+ temp)
        + _round_up(cout, 8) * wout_p * 4             # transposed f32 result
    )
    cap = max(8, vmem_budget_bytes // max(per_row, 1))

    if r <= 8:
        return r                                       # single block == array
    tr = min(r, 1024, cap)
    # >= 2 grid steps so the single "parallel" axis can be sharded across
    # cores (v6e megacore / v7x's two TensorCores).
    tr = min(tr, max(8, ((r + 1) // 2) // 8 * 8))
    tr = max(8, tr // 8 * 8)
    # Prefer a nearby tile that divides r exactly -> no row padding copy.
    for cand in range(tr, max(7, tr // 2 - 1), -8):
        if r % cand == 0:
            return cand
    return tr


def pack_weights(weights, cin, cout1):
    """weights[i]: (k_i, cin, cout1), tap-major.  Returns (5, cin, cout):
    tap slot s = 5 - k + t holds branch-k tap-t weights in its cout1 column
    block (zeros elsewhere), so per-tap accumulated matmuls over the 5 input
    offsets reproduce every branch's right-truncated convolution."""
    cout = len(KERNEL_SET) * cout1
    w_packed = jnp.zeros((MAX_K, cin, cout), weights[0].dtype)
    for b_idx, (kern, wk) in enumerate(zip(KERNEL_SET, weights)):
        for t in range(kern):
            s = MAX_K - kern + t
            w_packed = w_packed.at[s, :, b_idx * cout1:(b_idx + 1) * cout1].set(wk[t])
    return w_packed


def dilated_inception_rows(x_rows, w_packed, bias, dilation,
                           out_dtype=jnp.bfloat16):
    """Core entry point (channels-last rows in, channels-first rows out).

    x_rows: (R, W, cin); w_packed: (5, cin, cout); bias: (cout,).
    Returns (cout, R, Wout)."""
    r, w, cin = x_rows.shape
    cout = w_packed.shape[-1]
    wout = w - dilation * (MAX_K - 1)
    assert wout > 0, "input width too small for this dilation"

    # Sublane-align the im2col reshape: pad Wout to a multiple of 16 (bf16
    # sublane packing); extra columns are computed on zero-padded input and
    # truncated below.
    wout_p = _round_up(wout, 16)
    w_p = wout_p + dilation * (MAX_K - 1)

    out_itemsize = jnp.dtype(out_dtype).itemsize
    tr = _choose_row_tile(r, w_p, wout_p, cin, cout, out_itemsize=out_itemsize)
    r_pad = pl.cdiv(r, tr) * tr

    # One fused pad + bf16-cast copy of the activation (width padding for the
    # aligned reshape and, only if no divisor tile exists, row padding).
    x_b = jnp.pad(x_rows, ((0, r_pad - r), (0, w_p - w), (0, 0))
                  ).astype(jnp.bfloat16)
    w_b = w_packed.astype(jnp.bfloat16)
    b2 = bias.reshape(cout, 1).astype(jnp.float32)

    flops = 2 * r_pad * wout_p * (MAX_K * cin) * cout
    bytes_accessed = (x_b.size * 2 + w_b.size * 2 + b2.size * 4
                      + cout * r_pad * wout_p * out_itemsize)

    kernel = functools.partial(_dilated_inception_kernel,
                               dilation=dilation, wout_p=wout_p)
    out = pl.pallas_call(
        kernel,
        out_shape=jax.ShapeDtypeStruct((cout, r_pad * wout_p), out_dtype),
        grid=(r_pad // tr,),
        in_specs=[
            pl.BlockSpec((tr, w_p, cin), lambda i: (i, 0, 0)),
            pl.BlockSpec((MAX_K, cin, cout), lambda i: (0, 0, 0)),
            pl.BlockSpec((cout, 1), lambda i: (0, 0)),
        ],
        out_specs=pl.BlockSpec((cout, tr * wout_p), lambda i: (0, i)),
        compiler_params=pltpu.CompilerParams(
            dimension_semantics=("parallel",),
            vmem_limit_bytes=_VMEM_LIMIT_BYTES),
        cost_estimate=pl.CostEstimate(flops=flops, transcendentals=0,
                                      bytes_accessed=bytes_accessed),
    )(x_b, w_b, b2)

    # (cout, R_pad*Woutp) -> (cout, R, Wout): drop padded rows / columns.
    return out.reshape(cout, r_pad, wout_p)[:, :r, :wout]


def dilated_inception(x_nchw, weights, biases, dilation=2,
                      out_dtype=jnp.bfloat16):
    """NCHW wrapper matching the PyTorch module interface.
    weights: list of 4 arrays, weights[i] shape (kern_i, cin, cout1);
    biases : list of 4 arrays of shape (cout1,).

    Models that can stay channels-last across layers should call
    dilated_inception_rows() directly and drop both wrapper permutes."""
    b, cin, h, w = x_nchw.shape
    cout1 = weights[0].shape[-1]
    cout = len(KERNEL_SET) * cout1

    w_packed = pack_weights(weights, cin, cout1)
    bias = jnp.concatenate(biases)

    # NCHW -> (B*H, W, cin) rows.
    x_rows = jnp.transpose(x_nchw, (0, 2, 3, 1)).reshape(b * h, w, cin)
    out_cf = dilated_inception_rows(x_rows, w_packed, bias, dilation,
                                    out_dtype=out_dtype)
    wout = out_cf.shape[-1]
    # Kernel output is already channels-first; only a leading-axis swap left.
    return jnp.transpose(out_cf.reshape(cout, b, h, wout), (1, 0, 2, 3))


def reference_forward(x_nchw, weights, biases, dilation):
    """Pure-JAX (f32) reference matching the PyTorch forward."""
    wout = x_nchw.shape[-1] - dilation * (MAX_K - 1)
    outs = []
    for kern, w, b in zip(KERNEL_SET, weights, biases):
        w_oihw = jnp.transpose(w, (2, 1, 0))[:, :, None, :]   # (cout1,cin,1,k)
        y = jax.lax.conv_general_dilated(
            x_nchw, w_oihw, window_strides=(1, 1), padding="VALID",
            rhs_dilation=(1, dilation),
            dimension_numbers=("NCHW", "OIHW", "NCHW"))
        y = y + b[None, :, None, None]
        outs.append(y[..., -wout:])
    return jnp.concatenate(outs, axis=1)


if __name__ == "__main__":
    key = jax.random.PRNGKey(0)

    # Small shapes consistent with the module: B=2, cin=4, H=16 (nodes),
    # W=16 (time), cout=8 (so cout1 = 2), dilation_factor=2 -> Wout = 8.
    B, cin, H, W = 2, 4, 16, 16
    cout, dilation = 8, 2
    cout1 = cout // len(KERNEL_SET)

    key, kx = jax.random.split(key)
    x = jax.random.normal(kx, (B, cin, H, W), dtype=jnp.float32)

    # Deterministic parameter init (shapes match nn.Conv2d(cin, cout1, (1,k))).
    weights, biases = [], []
    for kern in KERNEL_SET:
        key, kw, kb = jax.random.split(key, 3)
        fan_in = cin * kern
        scale = 1.0 / jnp.sqrt(jnp.float32(fan_in))
        # tap-major (kern, cin, cout1): w[t, c, o] == torch_w[o, c, 0, t]
        weights.append(jax.random.uniform(kw, (kern, cin, cout1),
                                          dtype=jnp.float32,
                                          minval=-scale, maxval=scale))
        biases.append(jax.random.uniform(kb, (cout1,), dtype=jnp.float32,
                                         minval=-scale, maxval=scale))

    out = jax.block_until_ready(
        dilated_inception(x, weights, biases, dilation=dilation))
    ref = jax.block_until_ready(
        reference_forward(x, weights, biases, dilation))

    assert out.shape == (B, cout, H, W - dilation * (MAX_K - 1)), out.shape
    # bf16 activations/weights/output with f32 accumulation -> loose tolerance.
    err = float(jnp.max(jnp.abs(out.astype(jnp.float32) - ref)))
    assert jnp.allclose(out.astype(jnp.float32), ref,
                        atol=5e-2, rtol=5e-2), err

    # TODO(synk): self.norm (BatchNorm2d) exists in __init__ but is never
    # applied in forward(), so it is intentionally not implemented here.
    print("KERNEL_OK")
</pallas_src>

<mosaic_0001>
module attributes {stable_mosaic.version = 11 : i64} {
  func.func @_dilated_inception_kernel(%arg0: i32, %arg1: memref<16x24x4xbf16, #tpu.memory_space<vmem>>, %arg2: memref<5x4x8xbf16, #tpu.memory_space<vmem>>, %arg3: memref<8x1xf32, #tpu.memory_space<vmem>>, %arg4: memref<8x256xbf16, #tpu.memory_space<vmem>>) attributes {dimension_semantics = [#tpu.dimension_semantics<parallel>], iteration_bounds = array<i64: 2>, scalar_prefetch = 0 : i64, scratch_operands = 0 : i64, tpu.core_type = #tpu.core_type<tc>, window_params = [{transform_indices = @transform_0, window_bounds = array<i64: 16, 24, 4>}, {pipeline_mode = #tpu.pipeline_mode<synchronous>, transform_indices = @transform_1, window_bounds = array<i64: 5, 4, 8>}, {pipeline_mode = #tpu.pipeline_mode<synchronous>, transform_indices = @transform_2, window_bounds = array<i64: 8, 1>}, {transform_indices = @transform_3, window_bounds = array<i64: 8, 256>}]} {
    %c0 = arith.constant 0 : index
    %c0_0 = arith.constant 0 : index
    %c0_1 = arith.constant 0 : index
    %0 = vector.load %arg1[%c0, %c0_0, %c0_1] : memref<16x24x4xbf16, #tpu.memory_space<vmem>>, vector<16x16x4xbf16>
    %1 = vector.shape_cast %0 : vector<16x16x4xbf16> to vector<256x4xbf16>
    %c0_2 = arith.constant 0 : index
    %c0_3 = arith.constant 0 : index
    %c0_4 = arith.constant 0 : index
    %2 = vector.load %arg2[%c0_2, %c0_3, %c0_4] : memref<5x4x8xbf16, #tpu.memory_space<vmem>>, vector<1x4x8xbf16>
    %3 = vector.shape_cast %2 : vector<1x4x8xbf16> to vector<4x8xbf16>
    %cst = arith.constant dense<0.000000e+00> : vector<256x8xf32>
    %4 = tpu.matmul %1, %3, %cst {dimension_numbers = #tpu.dot_dimension_numbers<[1], [0], [0], [1], [0, 0, 1, 1], [], []>} : vector<256x4xbf16>, vector<4x8xbf16>, vector<256x8xf32> -> vector<256x8xf32>
    %c0_5 = arith.constant 0 : index
    %c2 = arith.constant 2 : index
    %c0_6 = arith.constant 0 : index
    %5 = vector.load %arg1[%c0_5, %c2, %c0_6] : memref<16x24x4xbf16, #tpu.memory_space<vmem>>, vector<16x16x4xbf16>
    %6 = vector.shape_cast %5 : vector<16x16x4xbf16> to vector<256x4xbf16>
    %c1 = arith.constant 1 : index
    %c0_7 = arith.constant 0 : index
    %c0_8 = arith.constant 0 : index
    %7 = vector.load %arg2[%c1, %c0_7, %c0_8] : memref<5x4x8xbf16, #tpu.memory_space<vmem>>, vector<1x4x8xbf16>
    %8 = vector.shape_cast %7 : vector<1x4x8xbf16> to vector<4x8xbf16>
    %cst_9 = arith.constant dense<0.000000e+00> : vector<256x8xf32>
    %9 = tpu.matmul %6, %8, %cst_9 {dimension_numbers = #tpu.dot_dimension_numbers<[1], [0], [0], [1], [0, 0, 1, 1], [], []>} : vector<256x4xbf16>, vector<4x8xbf16>, vector<256x8xf32> -> vector<256x8xf32>
    %10 = arith.addf %4, %9 : vector<256x8xf32>
    %c0_10 = arith.constant 0 : index
    %c4 = arith.constant 4 : index
    %c0_11 = arith.constant 0 : index
    %11 = vector.load %arg1[%c0_10, %c4, %c0_11] : memref<16x24x4xbf16, #tpu.memory_space<vmem>>, vector<16x16x4xbf16>
    %12 = vector.shape_cast %11 : vector<16x16x4xbf16> to vector<256x4xbf16>
    %c2_12 = arith.constant 2 : index
    %c0_13 = arith.constant 0 : index
    %c0_14 = arith.constant 0 : index
    %13 = vector.load %arg2[%c2_12, %c0_13, %c0_14] : memref<5x4x8xbf16, #tpu.memory_space<vmem>>, vector<1x4x8xbf16>
    %14 = vector.shape_cast %13 : vector<1x4x8xbf16> to vector<4x8xbf16>
    %cst_15 = arith.constant dense<0.000000e+00> : vector<256x8xf32>
    %15 = tpu.matmul %12, %14, %cst_15 {dimension_numbers = #tpu.dot_dimension_numbers<[1], [0], [0], [1], [0, 0, 1, 1], [], []>} : vector<256x4xbf16>, vector<4x8xbf16>, vector<256x8xf32> -> vector<256x8xf32>
    %16 = arith.addf %10, %15 : vector<256x8xf32>
    %c0_16 = arith.constant 0 : index
    %c6 = arith.constant 6 : index
    %c0_17 = arith.constant 0 : index
    %17 = vector.load %arg1[%c0_16, %c6, %c0_17] : memref<16x24x4xbf16, #tpu.memory_space<vmem>>, vector<16x16x4xbf16>
    %18 = vector.shape_cast %17 : vector<16x16x4xbf16> to vector<256x4xbf16>
    %c3 = arith.constant 3 : index
    %c0_18 = arith.constant 0 : index
    %c0_19 = arith.constant 0 : index
    %19 = vector.load %arg2[%c3, %c0_18, %c0_19] : memref<5x4x8xbf16, #tpu.memory_space<vmem>>, vector<1x4x8xbf16>
    %20 = vector.shape_cast %19 : vector<1x4x8xbf16> to vector<4x8xbf16>
    %cst_20 = arith.constant dense<0.000000e+00> : vector<256x8xf32>
    %21 = tpu.matmul %18, %20, %cst_20 {dimension_numbers = #tpu.dot_dimension_numbers<[1], [0], [0], [1], [0, 0, 1, 1], [], []>} : vector<256x4xbf16>, vector<4x8xbf16>, vector<256x8xf32> -> vector<256x8xf32>
    %22 = arith.addf %16, %21 : vector<256x8xf32>
    %c0_21 = arith.constant 0 : index
    %c8 = arith.constant 8 : index
    %c0_22 = arith.constant 0 : index
    %23 = vector.load %arg1[%c0_21, %c8, %c0_22] : memref<16x24x4xbf16, #tpu.memory_space<vmem>>, vector<16x16x4xbf16>
    %24 = vector.shape_cast %23 : vector<16x16x4xbf16> to vector<256x4xbf16>
    %c4_23 = arith.constant 4 : index
    %c0_24 = arith.constant 0 : index
    %c0_25 = arith.constant 0 : index
    %25 = vector.load %arg2[%c4_23, %c0_24, %c0_25] : memref<5x4x8xbf16, #tpu.memory_space<vmem>>, vector<1x4x8xbf16>
    %26 = vector.shape_cast %25 : vector<1x4x8xbf16> to vector<4x8xbf16>
    %cst_26 = arith.constant dense<0.000000e+00> : vector<256x8xf32>
    %27 = tpu.matmul %24, %26, %cst_26 {dimension_numbers = #tpu.dot_dimension_numbers<[1], [0], [0], [1], [0, 0, 1, 1], [], []>} : vector<256x4xbf16>, vector<4x8xbf16>, vector<256x8xf32> -> vector<256x8xf32>
    %28 = arith.addf %22, %27 : vector<256x8xf32>
    %29 = tpu.transpose %28, [1, 0] : vector<256x8xf32> -> vector<8x256xf32>
    %c0_27 = arith.constant 0 : index
    %c0_28 = arith.constant 0 : index
    %30 = vector.load %arg3[%c0_27, %c0_28] : memref<8x1xf32, #tpu.memory_space<vmem>>, vector<8x1xf32>
    %31 = vector.broadcast %30 : vector<8x1xf32> to vector<8x256xf32>
    %32 = arith.addf %29, %31 : vector<8x256xf32>
    %33 = arith.truncf %32 : vector<8x256xf32> to vector<8x256xbf16>
    %c0_29 = arith.constant 0 : index
    %c0_30 = arith.constant 0 : index
    %34 = vector.load %arg4[%c0_29, %c0_30] : memref<8x256xbf16, #tpu.memory_space<vmem>>, vector<8x256xbf16>
    tpu.vector_store %arg4[%c0_29, %c0_30], %33 {strides = array<i32>} : memref<8x256xbf16, #tpu.memory_space<vmem>>, vector<8x256xbf16>,
    return
  }
  func.func @transform_0(%arg0: i32) -> (i32, i32, i32) {
    %c0_i32 = arith.constant 0 : i32
    %c0_i32_0 = arith.constant 0 : i32
    %c0_i32_1 = arith.constant 0 : i32
    return %arg0, %c0_i32, %c0_i32_0 : i32, i32, i32
  }
  func.func @transform_1(%arg0: i32) -> (i32, i32, i32) {
    %c0_i32 = arith.constant 0 : i32
    %c0_i32_0 = arith.constant 0 : i32
    %c0_i32_1 = arith.constant 0 : i32
    %c0_i32_2 = arith.constant 0 : i32
    return %c0_i32, %c0_i32_0, %c0_i32_1 : i32, i32, i32
  }
  func.func @transform_2(%arg0: i32) -> (i32, i32) {
    %c0_i32 = arith.constant 0 : i32
    %c0_i32_0 = arith.constant 0 : i32
    %c0_i32_1 = arith.constant 0 : i32
    return %c0_i32, %c0_i32_0 : i32, i32
  }
  func.func @transform_3(%arg0: i32) -> (i32, i32) {
    %c0_i32 = arith.constant 0 : i32
    %c0_i32_0 = arith.constant 0 : i32
    return %c0_i32, %arg0 : i32, i32
  }
}

</mosaic_0001>

<bundles_post_ra>
// kernel: tpu_custom_call.1
= control target key start
LH: loop header
LB: loop body
LE: loop exit
PB: predicated region body
PF: predicated region fallthrough
CT: control target
= control target key end

     0   :  { %8 = vsyncpa [#allocation3], 0  ;;  %s3838_s0 = inlined_call_operand.vmem [shape: bf16[32,24,4], index: 0, kind: input, shape index: {}]   ;;  %s3839_s1 = inlined_call_operand.vmem [shape: bf16[5,4,8], index: 1, kind: input, shape index: {}]   ;;  %s3840_s2 = inlined_call_operand.vmem [shape: f32[8,1], index: 2, kind: input, shape index: {}]   ;;  %s3841_s3 = inlined_call_operand.hbm [shape: bf16[8,512], index: 3, kind: output, shape index: {}]  }
   0x1   :  { %10 = vsyncpa [#allocation3 + $0x1], 0  ;;  %s3134_s12 = smov 0   ;;  %s3136_s13 = smov 0  }
   0x2   :  { %s3138_s14 = smov 0   ;;  %s3140_s15 = smov 0  }
   0x3 LB: > { %s3155_s16 = sadd.s32 4294967295, %s3110_s15   ;;  %s2355_s17 = sadd.s32 4294967294, %s3110_s15   ;;  %s3110_s15 = sphi %s3140_s15, %s3853_s15   ;;  %s3106_s14 = sphi %s3138_s14, %s3852_s14   ;;  %s3102_s13 = sphi %s3136_s13, %s3851_s13   ;;  %s3098_s12 = sphi %s3134_s12, %s3850_s12  }
   0x4   : > { %s3159_s18 = sadd.s32 1, %s3110_s15   ;;  %s91_s19 = sadd.s32 1, %s3106_s14 }
   0x5   : > { %s88_s20 = ssub.s32 %s3110_s15, %s3159_s18  ;;  %p101_p0 = scmp.ne.s32.totalorder %s3106_s14, %s3102_s13 }
   0x6   : > { %p89_p1 = scmp.eq.s32.totalorder %s88_s20, 0  ;;  %p102_p2 = scmp.eq.s32.totalorder %s3155_s16, 1 }
   0x7   : > { %p107_p3 = scmp.ne.s32.totalorder %s3102_s13, %s3098_s12  ;;  %p108_p4 = scmp.eq.s32.totalorder %s2355_s17, 1 }
   0x8   : > { %s3170_s21 = scalar_select %p89_p1, %s3106_s14, %s91_s19  }
   0x9   : > { %p3172_p5 = por %p102_p2, %p101_p0  ;;  %p3176_p6 = por %p108_p4, %p107_p3 }
   0xa   : > { %p2358_p7 = scmp.ge.s32.totalorder %s3110_s15, 1  ;;  %p142_p8 = scmp.lt.s32.totalorder %s3110_s15, 3 }
   0xc   : > { %p143_p9 = pnand %p2358_p7, %p142_p8 }
   0xd   : > { %v2378_v0 = vld [vmem:[%s3839_s1 + $0x2] sm:$0x3] (!%p143_p9)  ;;  %vm503_vm0 = vcmask (!%p143_p9), 1041408   ;;  %v3188_v1 = vld [vmem:[%s3839_s1 + $0x4] sm:$0x3] (!%p143_p9)  ;;  %s2360_s28 = sshll.u32 (!%p143_p9), %s3155_s16, 4 }
   0xe   : > { %146 = sbr.rel (%p143_p9) target bundleno = 529 (0x211), region = 32  ;;  %2967 = vmatprep.subr.msk.bf16.mxu1 (!%p143_p9), %vm503_vm0, %v2378_v0  ;;  %2969 = vmatprep.subr.msk.bf16.mxu0 (!%p143_p9), %vm503_vm0, %v3188_v1  ;;  %v505_v2 = vsel (!%p143_p9), %vm503_vm0, %v2378_v0, 0  ;;  %v3196_v3 = vsel (!%p143_p9), %vm503_vm0, %v3188_v1, 0  ;;  %p168_p10 = scmp.lt.s32.totalorder (!%p143_p9), %s2360_s28, 31  ;;  %v208_v4 = vld [vmem:[%s3839_s1] sm:$0x3] (!%p143_p9) }
   0xf   : > { %2668 = vmatpush3.bf16.msra.mxu1 (!%p143_p9), %v505_v2  ;;  %2736 = vmatpush3.bf16.msra.mxu0 (!%p143_p9), %v3196_v3  ;;  %v2508_v5 = vld [vmem:[%s3839_s1 + $0x6] sm:$0x3] (!%p143_p9)  ;;  %vm289_vm1 = vcmask (!%p143_p9), 1042432   ;;  %vm290_vm2 = vcmask (!%p143_p9), 1046532   ;;  %vm1009_vm3 = vcmask (!%p143_p9), 1045508   ;;  %vm454_vm5 = vcmask (!%p143_p9), 31744  }
  0x10   : > { %2968 = vmatprep.subr.msk.bf16.mxu1 (!%p143_p9), %vm503_vm0, %v208_v4  ;;  %2971 = vmatprep.subr.msk.bf16.mxu0 (!%p143_p9), %vm503_vm0, %v2508_v5  ;;  %vm3213_vm4 = vmor (!%p143_p9), %vm289_vm1, %vm290_vm2  ;;  %v3218_v7 = vsel (!%p143_p9), %vm503_vm0, %v208_v4, 0  ;;  %v3221_v8 = vsel (!%p143_p9), %vm503_vm0, %v2508_v5, 0  ;;  %vm1481_vm7 = vcmask (!%p143_p9), 1040384   ;;  %vm1482_vm8 = vcmask (!%p143_p9), 1044484   ;;  %v2264_v12 = vld [vmem:[%s3840_s2] sm:$0xff] (!%p143_p9)  ;;  %s164_s20 = sand.u32 (!%p143_p9), 1, %s3102_s13  }
  0x11   : > { %vm3229_vm6 = vmor (!%p143_p9), %vm503_vm0, %vm1009_vm3  ;;  %s2359_s24 = sshll.u32 (!%p143_p9), %s164_s20, 3  ;;  %s2581_s25 = sshll.u32 (!%p143_p9), %s3155_s16, 7 }
  0x12   : > { %vm3390_vm9 = vmor (!%p143_p9), %vm1481_vm7, %vm1482_vm8  ;;  %s166_s26 = scalar_lea.vmem (!%p143_p9), [#allocation2], %s2359_s24  ;;  %s3796_s30 = scalar_lea.hbm (!%p143_p9), %s3841_s3, %s2581_s25 }
  0x13   : > { %s2296_s27 = sshll.u32 (!%p143_p9), %s166_s26, 4  ;;  %s2282_s4 = scalar_lea.sflag (!%p143_p9), [#allocation3], %s164_s20  ;;  %s3798_s27 = int_to_ptr.vmem [resolvable:$true] %s2296_s27 }
  0x14   : > { %s3048_s5 = scalar_lea.vmem (!%p143_p9), %s3798_s27, 128  ;;  %s3113_s16 = smov (!%p143_p9), [#allocation2]  }
  0x15   : > { %s3855_s28 = smov (!%p168_p10, %s2360_s28), 31  ;;  %p3049_p11 = scmp.ne.s32.totalorder %s3798_s27, %s3048_s5 }
  0x16   : > { %s2973_s6 = smul.u32 12, %s3855_s28 }
  0x17   : > { %p3050_p12 = pnand %p3049_p11, %p3172_p5 }
  0x18   : > { %s3211_s9 = scalar_lea.vmem %s3838_s0, %s2973_s6  ;;  %s3052_s6 = sshll.u32 %s3113_s16, 4  ;;  %s3053_s6 = int_to_ptr.vmem [resolvable:$false] %s3052_s6 }
  0x19   : > { %v3224_v9 = vld [vmem:[%s3211_s9 + $0x4] sm:$0xf]  ;;  %v209_v10 = vld [vmem:[%s3211_s9] sm:$0xe]  ;;  %v210_v11 = vld [vmem:[%s3211_s9 + $0x8] sm:$0x1]  ;;  %p3051_p13 = pneg %p3050_p12  ;;  %p3055_p0 = scmp.lt.s32.totalorder %s3798_s27, %s3053_s6 }
  0x1a   : > { %v2362_v13 = vrot.slane %v209_v10, 9  ;;  %v294_v14 = vrot.slane %v3224_v9, 5  ;;  %v297_v15 = vrot.slane %v210_v11, 5  ;;  %v944_v16 = vld [vmem:[%s3211_s9] sm:$0xc]  ;;  %v1013_v17 = vrot.slane %v3224_v9, 6 }
  0x1b   : > { %v945_v18 = vld [vmem:[%s3211_s9 + $0x8] sm:$0x3]  ;;  %v2443_v19 = vrot.slane %v944_v16, 10  ;;  %v3238_v20 = vld [vmem:[%s3211_s9 + $0x10] sm:$0xf]  ;;  %v1486_v21 = vrot.slane %v3224_v9, 7 }
  0x1c   : > { %v295_v22 = vsel %vm3213_vm4, %v2362_v13, %v294_v14  ;;  %v296_v23 = vrot.slane %v294_v14, 4  ;;  %v1015_v24 = vrot.slane %v1013_v17, 4  ;;  %v1016_v25 = vrot.slane %v945_v18, 6  ;;  %v211_v26 = vld [vmem:[%s3211_s9 + $0xc] sm:$0xe]  ;;  %s3054_s7 = scalar_lea.vmem %s3053_s6, 256 }
  0x1d   : > { %v1014_v27 = vsel %vm3229_vm6, %v2443_v19, %v1013_v17  ;;  %v212_v28 = vld [vmem:[%s3211_s9 + $0x14] sm:$0x1]  ;;  %v2363_v29 = vrot.slane %v211_v26, 9  ;;  %v301_v30 = vrot.slane %v3238_v20, 5  ;;  %v946_v31 = vld [vmem:[%s3211_s9 + $0xc] sm:$0xc]  ;;  %p3056_p1 = scmp.lt.s32.totalorder %s3054_s7, %s3048_s5 }
  0x1e   : > { %v298_v32 = vsel %vm3213_vm4, %v296_v23, %v297_v15  ;;  %v1017_v33 = vsel %vm3229_vm6, %v1015_v24, %v1016_v25  ;;  %v304_v34 = vrot.slane %v212_v28, 5  ;;  %v947_v35 = vld [vmem:[%s3211_s9 + $0x14] sm:$0x3]  ;;  %v2444_v36 = vrot.slane %v946_v31, 10  ;;  %v3255_v37 = vld [vmem:[%s3211_s9 + $0x1c] sm:$0xf] }
  0x1f   : > { %v2379_v38 = vcombine.low %v295_v22, %v298_v32  ;;  %v2460_v39 = vcombine.low %v1014_v27, %v1017_v33  ;;  %v302_v40 = vsel %vm3213_vm4, %v2363_v29, %v301_v30  ;;  %v303_v41 = vrot.slane %v301_v30, 4  ;;  %v213_v42 = vld [vmem:[%s3211_s9 + $0x18] sm:$0xe]  ;;  %v214_v43 = vld [vmem:[%s3211_s9 + $0x20] sm:$0x1]  ;;  %p3057_p2 = por %p3056_p1, %p3055_p0 }
  0x20   : > { %v1020_v44 = vrot.slane %v3238_v20, 6  ;;  %v1023_v45 = vrot.slane %v947_v35, 6  ;;  %v2364_v46 = vrot.slane %v213_v42, 9  ;;  %v308_v47 = vrot.slane %v3255_v37, 5  ;;  %v948_v48 = vld [vmem:[%s3211_s9 + $0x18] sm:$0xc] }
  0x21   : > { %2669 = vmatprep.mubr.msk.bf16.mxu1 %vm454_vm5, %v2379_v38  ;;  %2737 = vmatprep.mubr.msk.bf16.mxu0 %vm454_vm5, %v2460_v39  ;;  %v305_v49 = vsel %vm3213_vm4, %v303_v41, %v304_v34  ;;  %v311_v50 = vrot.slane %v214_v43, 5  ;;  %v949_v51 = vld [vmem:[%s3211_s9 + $0x20] sm:$0x3]  ;;  %v2445_v52 = vrot.slane %v948_v48, 10  ;;  %v1027_v53 = vrot.slane %v3255_v37, 6  ;;  %p3058_p3 = pnand %p3057_p2, %p3051_p13 }
  0x22   : > { %v2380_v54 = vcombine.low %v302_v40, %v305_v49  ;;  %v1021_v55 = vsel %vm3229_vm6, %v2444_v36, %v1020_v44  ;;  %v1022_v56 = vrot.slane %v1020_v44, 4  ;;  %v309_v57 = vsel %vm3213_vm4, %v2364_v46, %v308_v47  ;;  %v3275_v58 = vld [vmem:[%s3211_s9 + $0x28] sm:$0xf]  ;;  %v215_v59 = vld [vmem:[%s3211_s9 + $0x24] sm:$0xe] }
  0x23   : > { %v310_v60 = vrot.slane %v308_v47, 4  ;;  %v1028_v61 = vsel %vm3229_vm6, %v2445_v52, %v1027_v53  ;;  %v1029_v62 = vrot.slane %v1027_v53, 4  ;;  %v1030_v63 = vrot.slane %v949_v51, 6  ;;  %v216_v0 = vld [vmem:[%s3211_s9 + $0x2c] sm:$0x1] }
  0x24   : > { %2670 = vmatmul.mubr.msk.bf16.vlgmr.msra.gmra.mrb[0].mxu1 %vm454_vm5, %v2380_v54  ;;  %v1024_v2 = vsel %vm3229_vm6, %v1022_v56, %v1023_v45  ;;  %v2365_v4 = vrot.slane %v215_v59, 9  ;;  %v315_v5 = vrot.slane %v3275_v58, 5  ;;  %v318_v10 = vrot.slane %v216_v0, 5  ;;  %v950_v11 = vld [vmem:[%s3211_s9 + $0x24] sm:$0xc] }
  0x25   : > { %v3289_v13 = vld [vmem:[%s3839_s1 + $0x8] sm:$0x3]  ;;  %2702 = vmatpush3.bf16.msra.mxu1 %v3218_v7  ;;  %v2461_v14 = vcombine.low %v1021_v55, %v1024_v2  ;;  %v312_v15 = vsel %vm3213_vm4, %v310_v60, %v311_v50  ;;  %v1031_v16 = vsel %vm3229_vm6, %v1029_v62, %v1030_v63  ;;  %v951_v17 = vld [vmem:[%s3211_s9 + $0x2c] sm:$0x3]  ;;  %v2446_v18 = vrot.slane %v950_v11, 10 }
  0x26   : > { %v3298_v19 = vld [vmem:[%s3211_s9 + $0x34] sm:$0xf]  ;;  %v2381_v22 = vcombine.low %v309_v57, %v312_v15  ;;  %v2462_v23 = vcombine.low %v1028_v61, %v1031_v16  ;;  %v316_v24 = vsel %vm3213_vm4, %v2365_v4, %v315_v5  ;;  %v317_v25 = vrot.slane %v315_v5, 4  ;;  %v217_v7 = vld [vmem:[%s3211_s9 + $0x30] sm:$0xe]  ;;  %2970 = vmatprep.subr.msk.bf16.mxu1 %vm503_vm0, %v3188_v1 }
  0x27   : > { %v218_v26 = vld [vmem:[%s3211_s9 + $0x38] sm:$0x1]  ;;  %2738 = vmatmul.mubr.msk.bf16.vlgmr.msra.gmra.mrb[0].mxu0 %vm454_vm5, %v2461_v14  ;;  %v1034_v27 = vrot.slane %v3275_v58, 6  ;;  %v1037_v28 = vrot.slane %v951_v17, 6  ;;  %v2366_v29 = vrot.slane %v217_v7, 9  ;;  %v322_v30 = vrot.slane %v3298_v19, 5 }
  0x28   : > { %v952_v31 = vld [vmem:[%s3211_s9 + $0x30] sm:$0xc]  ;;  %2770 = vmatpush3.bf16.msra.mxu0 %v3221_v8  ;;  %2673 = vmatprep.mubr.msk.bf16.mxu1 %vm454_vm5, %v2381_v22  ;;  %v319_v32 = vsel %vm3213_vm4, %v317_v25, %v318_v10  ;;  %v325_v33 = vrot.slane %v218_v26, 5  ;;  %v953_v1 = vld [vmem:[%s3211_s9 + $0x38] sm:$0x3]  ;;  %v1041_v35 = vrot.slane %v3298_v19, 6 }
  0x29   : > { %v2447_v34 = vrot.slane %v952_v31, 10  ;;  %2741 = vmatprep.mubr.msk.bf16.mxu0 %vm454_vm5, %v2462_v23  ;;  %v2382_v36 = vcombine.low %v316_v24, %v319_v32  ;;  %v1035_v38 = vsel %vm3229_vm6, %v2446_v18, %v1034_v27  ;;  %v1036_v39 = vrot.slane %v1034_v27, 4  ;;  %v3322_v40 = vld [vmem:[%s3211_s9 + $0x40] sm:$0xf]  ;;  %v219_v41 = vld [vmem:[%s3211_s9 + $0x3c] sm:$0xe]  ;;  %2972 = vmatprep.subr.msk.bf16.mxu0 %vm503_vm0, %v3289_v13 }
  0x2a   : > { %v323_v8 = vsel %vm3213_vm4, %v2366_v29, %v322_v30  ;;  %v324_v42 = vrot.slane %v322_v30, 4  ;;  %v1043_v44 = vrot.slane %v1041_v35, 4  ;;  %v1044_v45 = vrot.slane %v953_v1, 6  ;;  %v220_v46 = vld [vmem:[%s3211_s9 + $0x44] sm:$0x1] }
  0x2b   : > { %v1042_v43 = vsel %vm3229_vm6, %v2447_v34, %v1041_v35  ;;  %v1038_v47 = vsel %vm3229_vm6, %v1036_v39, %v1037_v28  ;;  %v2367_v48 = vrot.slane %v219_v41, 9  ;;  %v329_v49 = vrot.slane %v3322_v40, 5  ;;  %v954_v51 = vld [vmem:[%s3211_s9 + $0x3c] sm:$0xc]  ;;  %v955_v55 = vld [vmem:[%s3211_s9 + $0x44] sm:$0x3] }
  0x2c   : > { %v332_v50 = vrot.slane %v220_v46, 5  ;;  %2674 = vmatmul.mubr.msk.bf16.gmra.mrb[4].mxu1 %vm454_vm5, %v2382_v36  ;;  %v2463_v52 = vcombine.low %v1035_v38, %v1038_v47  ;;  %v326_v53 = vsel %vm3213_vm4, %v324_v42, %v325_v33  ;;  %v1045_v54 = vsel %vm3229_vm6, %v1043_v44, %v1044_v45  ;;  %v3341_v57 = vld [vmem:[%s3211_s9 + $0x4c] sm:$0xf]  ;;  %v221_v63 = vld [vmem:[%s3211_s9 + $0x48] sm:$0xe] }
  0x2d   : > { %v2448_v56 = vrot.slane %v954_v51, 10  ;;  %v2383_v59 = vcombine.low %v323_v8, %v326_v53  ;;  %v2464_v60 = vcombine.low %v1042_v43, %v1045_v54  ;;  %v330_v61 = vsel %vm3213_vm4, %v2367_v48, %v329_v49  ;;  %v222_v0 = vld [vmem:[%s3211_s9 + $0x50] sm:$0x1]  ;;  %v956_v11 = vld [vmem:[%s3211_s9 + $0x48] sm:$0xc] }
  0x2e   : > { %v331_v62 = vrot.slane %v329_v49, 4  ;;  %v1048_v2 = vrot.slane %v3322_v40, 6  ;;  %v1051_v4 = vrot.slane %v955_v55, 6  ;;  %v2368_v5 = vrot.slane %v221_v63, 9  ;;  %v957_v16 = vld [vmem:[%s3211_s9 + $0x50] sm:$0x3] }
  0x2f   : > { %v336_v10 = vrot.slane %v3341_v57, 5  ;;  %2742 = vmatmul.mubr.msk.bf16.gmra.mrb[4].mxu0 %vm454_vm5, %v2463_v52  ;;  %2677 = vmatprep.mubr.msk.bf16.mxu1 %vm454_vm5, %v2383_v59  ;;  %v339_v15 = vrot.slane %v222_v0, 5  ;;  %v2449_v17 = vrot.slane %v956_v11, 10  ;;  %v1055_v18 = vrot.slane %v3341_v57, 6  ;;  %v3362_v7 = vld [vmem:[%s3211_s9 + $0x58] sm:$0xf] }
  0x30   : > { %v333_v14 = vsel %vm3213_vm4, %v331_v62, %v332_v50  ;;  %2745 = vmatprep.mubr.msk.bf16.mxu0 %vm454_vm5, %v2464_v60  ;;  %v1049_v23 = vsel %vm3229_vm6, %v2448_v56, %v1048_v2  ;;  %v1050_v24 = vrot.slane %v1048_v2, 4  ;;  %v223_v26 = vld [vmem:[%s3211_s9 + $0x54] sm:$0xe]  ;;  %v1058_v30 = vrot.slane %v957_v16, 6  ;;  %v224_v31 = vld [vmem:[%s3211_s9 + $0x5c] sm:$0x1] }
  0x31   : > { %v2384_v22 = vcombine.low %v330_v61, %v333_v14  ;;  %v337_v25 = vsel %vm3213_vm4, %v2368_v5, %v336_v10  ;;  %v338_v27 = vrot.slane %v336_v10, 4  ;;  %v1056_v28 = vsel %vm3229_vm6, %v2449_v17, %v1055_v18  ;;  %v958_v35 = vld [vmem:[%s3211_s9 + $0x54] sm:$0xc]  ;;  %v959_v8 = vld [vmem:[%s3211_s9 + $0x5c] sm:$0x3] }
  0x32   : > { %v1057_v29 = vrot.slane %v1055_v18, 4  ;;  %v1052_v32 = vsel %vm3229_vm6, %v1050_v24, %v1051_v4  ;;  %v2369_v33 = vrot.slane %v223_v26, 9  ;;  %v343_v1 = vrot.slane %v3362_v7, 5  ;;  %v3378_v42 = vld [vmem:[%s3211_s9 + $0x64] sm:$0xf] }
  0x33   : > { %v346_v34 = vrot.slane %v224_v31, 5  ;;  %v2465_v36 = vcombine.low %v1049_v23, %v1052_v32  ;;  %v340_v38 = vsel %vm3213_vm4, %v338_v27, %v339_v15  ;;  %v2450_v41 = vrot.slane %v958_v35, 10  ;;  %v225_v47 = vld [vmem:[%s3211_s9 + $0x60] sm:$0xe]  ;;  %v226_v48 = vld [vmem:[%s3211_s9 + $0x68] sm:$0x1] }
  0x34   : > { %v1059_v39 = vsel %vm3229_vm6, %v1057_v29, %v1058_v30  ;;  %2678 = vmatmul.mubr.msk.bf16.gmra.mrb[8].mxu1 %vm454_vm5, %v2384_v22  ;;  %v2385_v43 = vcombine.low %v337_v25, %v340_v38  ;;  %v344_v45 = vsel %vm3213_vm4, %v2369_v33, %v343_v1  ;;  %v345_v46 = vrot.slane %v343_v1, 4  ;;  %v1417_v53 = vld [vmem:[%s3211_s9] sm:$0x8]  ;;  %v1418_v59 = vld [vmem:[%s3211_s9 + $0x8] sm:$0x7] }
  0x35   : > { %v2466_v44 = vcombine.low %v1056_v28, %v1059_v39  ;;  %v1062_v49 = vrot.slane %v3362_v7, 6  ;;  %v1065_v50 = vrot.slane %v959_v8, 6  ;;  %v2370_v51 = vrot.slane %v225_v47, 9  ;;  %v3406_v4 = vld [vmem:[%s3211_s9 + $0x70] sm:$0xf] }
  0x36   : > { %v350_v52 = vrot.slane %v3378_v42, 5  ;;  %2681 = vmatprep.mubr.msk.bf16.mxu1 %vm454_vm5, %v2385_v43  ;;  %v347_v55 = vsel %vm3213_vm4, %v345_v46, %v346_v34  ;;  %v353_v56 = vrot.slane %v226_v48, 5  ;;  %v2492_v60 = vrot.slane %v1417_v53, 11  ;;  %v227_v5 = vld [vmem:[%s3211_s9 + $0x6c] sm:$0xe] }
  0x37   : > { %v1488_v61 = vrot.slane %v1486_v21, 4  ;;  %2746 = vmatmul.mubr.msk.bf16.gmra.mrb[8].mxu0 %vm454_vm5, %v2465_v36  ;;  %v2386_v62 = vcombine.low %v344_v45, %v347_v55  ;;  %v1063_v63 = vsel %vm3229_vm6, %v2450_v41, %v1062_v49  ;;  %v1064_v0 = vrot.slane %v1062_v49, 4  ;;  %v228_v15 = vld [vmem:[%s3211_s9 + $0x74] sm:$0x1]  ;;  %v1419_v23 = vld [vmem:[%s3211_s9 + $0xc] sm:$0x8] }
  0x38   : > { %v351_v2 = vsel %vm3213_vm4, %v2370_v51, %v350_v52  ;;  %2749 = vmatprep.mubr.msk.bf16.mxu0 %vm454_vm5, %v2466_v44  ;;  %v352_v10 = vrot.slane %v350_v52, 4  ;;  %v1487_v11 = vsel %vm3390_vm9, %v2492_v60, %v1486_v21  ;;  %v1489_v14 = vrot.slane %v1418_v59, 7  ;;  %v1420_v24 = vld [vmem:[%s3211_s9 + $0x14] sm:$0x7]  ;;  %v3425_v28 = vld [vmem:[%s3211_s9 + $0x7c] sm:$0xf] }
  0x39   : > { %v2371_v16 = vrot.slane %v227_v5, 9  ;;  %v1066_v17 = vsel %vm3229_vm6, %v1064_v0, %v1065_v50  ;;  %v357_v18 = vrot.slane %v3406_v4, 5  ;;  %v360_v22 = vrot.slane %v228_v15, 5  ;;  %v229_v29 = vld [vmem:[%s3211_s9 + $0x78] sm:$0xe] }
  0x3a   : > { %v2467_v25 = vcombine.low %v1063_v63, %v1066_v17  ;;  %v354_v26 = vsel %vm3213_vm4, %v352_v10, %v353_v56  ;;  %v1490_v21 = vsel %vm3390_vm9, %v1488_v61, %v1489_v14  ;;  %v2493_v27 = vrot.slane %v1419_v23, 11  ;;  %v230_v1 = vld [vmem:[%s3211_s9 + $0x80] sm:$0x1]  ;;  %v1421_v34 = vld [vmem:[%s3211_s9 + $0x18] sm:$0x8] }
  0x3b   : > { %v2387_v30 = vcombine.low %v351_v2, %v354_v26  ;;  %v2509_v31 = vcombine.low %v1487_v11, %v1490_v21  ;;  %v358_v32 = vsel %vm3213_vm4, %v2371_v16, %v357_v18  ;;  %v359_v33 = vrot.slane %v357_v18, 4  ;;  %v1422_v8 = vld [vmem:[%s3211_s9 + $0x20] sm:$0x7]  ;;  %v3441_v46 = vld [vmem:[%s3211_s9 + $0x88] sm:$0xf] }
  0x3c   : > { %2682 = vmatmul.mubr.msk.bf16.gmra.mrb[12].mxu1 %vm454_vm5, %v2386_v62  ;;  %v1493_v35 = vrot.slane %v3238_v20, 7  ;;  %v1496_v36 = vrot.slane %v1420_v24, 7  ;;  %v2372_v38 = vrot.slane %v229_v29, 9  ;;  %v364_v39 = vrot.slane %v3425_v28, 5  ;;  %v231_v51 = vld [vmem:[%s3211_s9 + $0x84] sm:$0xe] }
  0x3d   : > { %2685 = vmatprep.mubr.msk.bf16.mxu1 %vm454_vm5, %v2387_v30  ;;  %v361_v41 = vsel %vm3213_vm4, %v359_v33, %v360_v22  ;;  %v367_v43 = vrot.slane %v230_v1, 5  ;;  %v2494_v44 = vrot.slane %v1421_v34, 11  ;;  %v1500_v45 = vrot.slane %v3255_v37, 7  ;;  %v232_v52 = vld [vmem:[%s3211_s9 + $0x8c] sm:$0x1] }
  0x3e   : > { %v2388_v47 = vcombine.low %v358_v32, %v361_v41  ;;  %v1494_v48 = vsel %vm3390_vm9, %v2493_v27, %v1493_v35  ;;  %v1495_v49 = vrot.slane %v1493_v35, 4  ;;  %v365_v50 = vsel %vm3213_vm4, %v2372_v38, %v364_v39  ;;  %v1423_v60 = vld [vmem:[%s3211_s9 + $0x24] sm:$0x8]  ;;  %v1424_v2 = vld [vmem:[%s3211_s9 + $0x2c] sm:$0x7] }
  0x3f   : > { %2750 = vmatmul.mubr.msk.bf16.gmra.mrb[12].mxu0 %vm454_vm5, %v2467_v25  ;;  %v366_v53 = vrot.slane %v364_v39, 4  ;;  %v1501_v55 = vsel %vm3390_vm9, %v2494_v44, %v1500_v45  ;;  %v1502_v56 = vrot.slane %v1500_v45, 4  ;;  %v1503_v59 = vrot.slane %v1422_v8, 7  ;;  %v3463_v15 = vld [vmem:[%s3211_s9 + $0x94] sm:$0xf] }
  0x40   : > { %2771 = vmatprep.mubr.msk.bf16.mxu0 %vm454_vm5, %v2509_v31  ;;  %v1497_v61 = vsel %vm3390_vm9, %v1495_v49, %v1496_v36  ;;  %v2373_v62 = vrot.slane %v231_v51, 9  ;;  %v371_v63 = vrot.slane %v3441_v46, 5  ;;  %v374_v0 = vrot.slane %v232_v52, 5  ;;  %v233_v16 = vld [vmem:[%s3211_s9 + $0x90] sm:$0xe] }
  0x41   : > { %v2510_v5 = vcombine.low %v1494_v48, %v1497_v61  ;;  %v368_v10 = vsel %vm3213_vm4, %v366_v53, %v367_v43  ;;  %v1504_v11 = vsel %vm3390_vm9, %v1502_v56, %v1503_v59  ;;  %v2495_v14 = vrot.slane %v1423_v60, 11  ;;  %v234_v24 = vld [vmem:[%s3211_s9 + $0x98] sm:$0x1]  ;;  %v1425_v25 = vld [vmem:[%s3211_s9 + $0x30] sm:$0x8] }
  0x42   : > { %v2389_v17 = vcombine.low %v365_v50, %v368_v10  ;;  %v2511_v18 = vcombine.low %v1501_v55, %v1504_v11  ;;  %v372_v22 = vsel %vm3213_vm4, %v2373_v62, %v371_v63  ;;  %v373_v23 = vrot.slane %v371_v63, 4  ;;  %v1426_v30 = vld [vmem:[%s3211_s9 + $0x38] sm:$0x7]  ;;  %v3478_v34 = vld [vmem:[%s3211_s9 + $0xa0] sm:$0xf] }
  0x43   : > { %v1507_v26 = vrot.slane %v3275_v58, 7  ;;  %v1510_v21 = vrot.slane %v1424_v2, 7  ;;  %v2374_v27 = vrot.slane %v233_v16, 9  ;;  %v378_v29 = vrot.slane %v3463_v15, 5  ;;  %v235_v8 = vld [vmem:[%s3211_s9 + $0x9c] sm:$0xe] }
  0x44   : > { %2686 = vmatmul.mubr.msk.bf16.gmra.mrb[16].mxu1 %vm454_vm5, %v2388_v47  ;;  %v375_v31 = vsel %vm3213_vm4, %v373_v23, %v374_v0  ;;  %v381_v32 = vrot.slane %v234_v24, 5  ;;  %v2496_v33 = vrot.slane %v1425_v25, 11  ;;  %v1514_v1 = vrot.slane %v3298_v19, 7  ;;  %v236_v41 = vld [vmem:[%s3211_s9 + $0xa4] sm:$0x1] }
  0x45   : > { %v2005_v35 = vsel %vm503_vm0, %v3289_v13, 0  ;;  %2689 = vmatprep.mubr.msk.bf16.mxu1 %vm454_vm5, %v2389_v17  ;;  %v2390_v36 = vcombine.low %v372_v22, %v375_v31  ;;  %v1508_v38 = vsel %vm3390_vm9, %v2495_v14, %v1507_v26  ;;  %v1509_v39 = vrot.slane %v1507_v26, 4  ;;  %v1427_v51 = vld [vmem:[%s3211_s9 + $0x3c] sm:$0x8]  ;;  %v1428_v56 = vld [vmem:[%s3211_s9 + $0x44] sm:$0x7] }
  0x46   : > { %v379_v43 = vsel %vm3213_vm4, %v2374_v27, %v378_v29  ;;  %v380_v44 = vrot.slane %v378_v29, 4  ;;  %v1516_v45 = vrot.slane %v1514_v1, 4  ;;  %v1517_v47 = vrot.slane %v1426_v30, 7  ;;  %v3503_v59 = vld [vmem:[%s3211_s9 + $0xac] sm:$0xf] }
  0x47   : > { %2772 = vmatmul.mubr.msk.bf16.vlgmr.msra.gmra.mrb[0].mxu0 %vm454_vm5, %v2510_v5  ;;  %v1511_v13 = vsel %vm3390_vm9, %v1509_v39, %v1510_v21  ;;  %v2375_v48 = vrot.slane %v235_v8, 9  ;;  %v385_v49 = vrot.slane %v3478_v34, 5  ;;  %v388_v50 = vrot.slane %v236_v41, 5  ;;  %v237_v60 = vld [vmem:[%s3211_s9 + $0xa8] sm:$0xe] }
  0x48   : > { %2804 = vmatpush3.bf16.msra.mxu0 %v2005_v35  ;;  %2775 = vmatprep.mubr.msk.bf16.mxu0 %vm454_vm5, %v2511_v18  ;;  %v382_v52 = vsel %vm3213_vm4, %v380_v44, %v381_v32  ;;  %v1515_v53 = vsel %vm3390_vm9, %v2496_v33, %v1514_v1  ;;  %v1518_v55 = vsel %vm3390_vm9, %v1516_v45, %v1517_v47  ;;  %v238_v0 = vld [vmem:[%s3211_s9 + $0xb0] sm:$0x1]  ;;  %v1429_v2 = vld [vmem:[%s3211_s9 + $0x48] sm:$0x8]  ;;  %v2497_v5 = vrot.slane %v1427_v51, 11 }
  0x49   : > { %v2512_v61 = vcombine.low %v1508_v38, %v1511_v13  ;;  %v2391_v62 = vcombine.low %v379_v43, %v382_v52  ;;  %v387_v63 = vrot.slane %v385_v49, 4  ;;  %v1521_v10 = vrot.slane %v3322_v40, 7  ;;  %v1430_v16 = vld [vmem:[%s3211_s9 + $0x50] sm:$0x7]  ;;  %v3515_v24 = vld [vmem:[%s3211_s9 + $0xb8] sm:$0xf] }
  0x4a   : > { %v2376_v11 = vrot.slane %v237_v60, 9  ;;  %v392_v14 = vrot.slane %v3503_v59, 5  ;;  %v2513_v17 = vcombine.low %v1515_v53, %v1518_v55  ;;  %v386_v18 = vsel %vm3213_vm4, %v2375_v48, %v385_v49  ;;  %v239_v29 = vld [vmem:[%s3211_s9 + $0xb4] sm:$0xe]  ;;  %v240_v33 = vld [vmem:[%s3211_s9 + $0xbc] sm:$0x1] }
  0x4b   : > { %v395_v22 = vrot.slane %v238_v0, 5  ;;  %v1528_v23 = vrot.slane %v3341_v57, 7  ;;  %v389_v25 = vsel %vm3213_vm4, %v387_v63, %v388_v50  ;;  %v1523_v26 = vrot.slane %v1521_v10, 4  ;;  %v1431_v45 = vld [vmem:[%s3211_s9 + $0x54] sm:$0x8] }
  0x4c   : > { %2690 = vmatmul.mubr.msk.bf16.gmra.mrb[20].mxu1 %vm454_vm5, %v2390_v36  ;;  %v1524_v21 = vrot.slane %v1428_v56, 7  ;;  %v2498_v27 = vrot.slane %v1429_v2, 11  ;;  %v394_v30 = vrot.slane %v392_v14, 4  ;;  %v1531_v32 = vrot.slane %v1430_v16, 7  ;;  %v1432_v49 = vld [vmem:[%s3211_s9 + $0x5c] sm:$0x7] }
  0x4d   : > { %2693 = vmatprep.mubr.msk.bf16.mxu1 %vm454_vm5, %v2391_v62  ;;  %v1530_v31 = vrot.slane %v1528_v23, 4  ;;  %v393_v1 = vsel %vm3213_vm4, %v2376_v11, %v392_v14  ;;  %v399_v35 = vrot.slane %v3515_v24, 5  ;;  %v2392_v36 = vcombine.low %v386_v18, %v389_v25  ;;  %v1433_v51 = vld [vmem:[%s3211_s9 + $0x60] sm:$0x8]  ;;  %v1434_v52 = vld [vmem:[%s3211_s9 + $0x68] sm:$0x7] }
  0x4e   : > { %v1522_v38 = vsel %vm3390_vm9, %v2497_v5, %v1521_v10  ;;  %v396_v39 = vsel %vm3213_vm4, %v394_v30, %v395_v22  ;;  %v1525_v8 = vsel %vm3390_vm9, %v1523_v26, %v1524_v21  ;;  %v1529_v41 = vsel %vm3390_vm9, %v2498_v27, %v1528_v23  ;;  %v176_v11 = vld [vmem:[%s3211_s9] sm:$0xf]  ;;  %v1435_v25 = vld [vmem:[%s3211_s9 + $0x6c] sm:$0x8]  ;;  %v1436_v26 = vld [vmem:[%s3211_s9 + $0x74] sm:$0x7] }
  0x4f   : > { %2776 = vmatmul.mubr.msk.bf16.gmra.mrb[4].mxu0 %vm454_vm5, %v2512_v61  ;;  %v2377_v43 = vrot.slane %v239_v29, 9  ;;  %v402_v44 = vrot.slane %v240_v33, 5  ;;  %v2393_v47 = vcombine.low %v393_v1, %v396_v39  ;;  %v1532_v13 = vsel %vm3390_vm9, %v1530_v31, %v1531_v32  ;;  %v1437_v27 = vld [vmem:[%s3211_s9 + $0x78] sm:$0x8]  ;;  %v1438_v29 = vld [vmem:[%s3211_s9 + $0x80] sm:$0x7] }
  0x50   : > { %2779 = vmatprep.mubr.msk.bf16.mxu0 %vm454_vm5, %v2513_v17  ;;  %v401_v48 = vrot.slane %v399_v35, 4  ;;  %v1535_v50 = vrot.slane %v3362_v7, 7  ;;  %v1542_v53 = vrot.slane %v3378_v42, 7  ;;  %v2514_v55 = vcombine.low %v1522_v38, %v1525_v8  ;;  %v180_v8 = vld [vmem:[%s3211_s9 + $0x18] sm:$0xf] }
  0x51   : > { %v2499_v56 = vrot.slane %v1431_v45, 11  ;;  %v2515_v60 = vcombine.low %v1529_v41, %v1532_v13  ;;  %v400_v61 = vsel %vm3213_vm4, %v2377_v43, %v399_v35  ;;  %v1538_v63 = vrot.slane %v1432_v49, 7  ;;  %v178_v35 = vld [vmem:[%s3211_s9 + $0xc] sm:$0xf]  ;;  %v1439_v49 = vld [vmem:[%s3211_s9 + $0x84] sm:$0x8] }
  0x52   : > { %v1537_v62 = vrot.slane %v1535_v50, 4  ;;  %v403_v0 = vsel %vm3213_vm4, %v401_v48, %v402_v44  ;;  %v2500_v2 = vrot.slane %v1433_v51, 11  ;;  %v1544_v5 = vrot.slane %v1542_v53, 4 }
  0x53   : > { %v1545_v10 = vrot.slane %v1434_v52, 7  ;;  %v2394_v14 = vcombine.low %v400_v61, %v403_v0  ;;  %v1536_v16 = vsel %vm3390_vm9, %v2499_v56, %v1535_v50  ;;  %v1549_v6 = vrot.slane %v3406_v4, 7  ;;  %v1440_v50 = vld [vmem:[%s3211_s9 + $0x8c] sm:$0x7]  ;;  %v1441_v52 = vld [vmem:[%s3211_s9 + $0x90] sm:$0x8] }
  0x54   : > { %2694 = vmatmul.mubr.msk.bf16.gmra.mrb[24].mxu1 %vm454_vm5, %v2392_v36  ;;  %v1539_v17 = vsel %vm3390_vm9, %v1537_v62, %v1538_v63  ;;  %v2411_v18 = vcombine.low %v176_v11, %v3224_v9  ;;  %v1543_v22 = vsel %vm3390_vm9, %v2500_v2, %v1542_v53  ;;  %v1556_v21 = vrot.slane %v3425_v28, 7  ;;  %v1442_v53 = vld [vmem:[%s3211_s9 + $0x98] sm:$0x7]  ;;  %v182_v63 = vld [vmem:[%s3211_s9 + $0x24] sm:$0xf] }
  0x55   : > { %2697 = vmatprep.mubr.msk.bf16.mxu1 %vm454_vm5, %v2393_v47  ;;  %v1546_v23 = vsel %vm3390_vm9, %v1544_v5, %v1545_v10  ;;  %v2516_v30 = vcombine.low %v1536_v16, %v1539_v17  ;;  %v2501_v32 = vrot.slane %v1435_v25, 11  ;;  %v1551_v33 = vrot.slane %v1549_v6, 4  ;;  %v184_v10 = vld [vmem:[%s3211_s9 + $0x30] sm:$0xf] }
  0x56   : > { %v2517_v31 = vcombine.low %v1543_v22, %v1546_v23  ;;  %v1552_v1 = vrot.slane %v1436_v26, 7  ;;  %v2502_v36 = vrot.slane %v1437_v27, 11  ;;  %v1558_v38 = vrot.slane %v1556_v21, 4  ;;  %v1443_v22 = vld [vmem:[%s3211_s9 + $0x9c] sm:$0x8] }
  0x57   : > { %2780 = vmatmul.mubr.msk.bf16.gmra.mrb[8].mxu0 %vm454_vm5, %v2514_v55  ;;  %v1559_v39 = vrot.slane %v1438_v29, 7  ;;  %v2412_v41 = vcombine.low %v178_v35, %v3238_v20  ;;  %v1550_v43 = vsel %vm3390_vm9, %v2501_v32, %v1549_v6  ;;  %v1563_v45 = vrot.slane %v3441_v46, 7  ;;  %v1444_v23 = vld [vmem:[%s3211_s9 + $0xa4] sm:$0x7]  ;;  %v1445_v26 = vld [vmem:[%s3211_s9 + $0xa8] sm:$0x8] }
  0x58   : > { %2783 = vmatprep.mubr.msk.bf16.mxu0 %vm454_vm5, %v2515_v60  ;;  %v1553_v44 = vsel %vm3390_vm9, %v1551_v33, %v1552_v1  ;;  %v2413_v47 = vcombine.low %v180_v8, %v3255_v37  ;;  %v1557_v13 = vsel %vm3390_vm9, %v2502_v36, %v1556_v21  ;;  %v1570_v51 = vrot.slane %v3463_v15, 7  ;;  %v1446_v21 = vld [vmem:[%s3211_s9 + $0xb0] sm:$0x7]  ;;  %v186_v33 = vld [vmem:[%s3211_s9 + $0x3c] sm:$0xf] }
  0x59   : > { %v1560_v48 = vsel %vm3390_vm9, %v1558_v38, %v1559_v39  ;;  %v2518_v55 = vcombine.low %v1550_v43, %v1553_v44  ;;  %v2503_v60 = vrot.slane %v1439_v49, 11  ;;  %v1565_v61 = vrot.slane %v1563_v45, 4  ;;  %v188_v38 = vld [vmem:[%s3211_s9 + $0x48] sm:$0xf] }
  0x5a   : > { %v2519_v56 = vcombine.low %v1557_v13, %v1560_v48  ;;  %v1566_v62 = vrot.slane %v1440_v50, 7  ;;  %v2504_v0 = vrot.slane %v1441_v52, 11  ;;  %v1572_v2 = vrot.slane %v1570_v51, 4  ;;  %v1447_v13 = vld [vmem:[%s3211_s9 + $0xb4] sm:$0x8] }
  0x5b   : > { %v1573_v5 = vrot.slane %v1442_v53, 7  ;;  %v2414_v11 = vcombine.low %v182_v63, %v3275_v58  ;;  %v1577_v16 = vrot.slane %v3478_v34, 7  ;;  %v2415_v17 = vcombine.low %v184_v10, %v3298_v19  ;;  %v1448_v48 = vld [vmem:[%s3211_s9 + $0xbc] sm:$0x7]  ;;  %v194_v10 = vld [vmem:[%s3211_s9 + $0x6c] sm:$0xf] }
  0x5c   : > { %2698 = vmatmul.mubr.msk.bf16.gmra.mrb[28].mxu1 %vm454_vm5, %v2394_v14  ;;  %v1567_v14 = vsel %vm3390_vm9, %v1565_v61, %v1566_v62  ;;  %v1571_v6 = vsel %vm3390_vm9, %v2504_v0, %v1570_v51  ;;  %v1584_v25 = vrot.slane %v3503_v59, 7  ;;  %v1580_v32 = vrot.slane %v1444_v23, 7  ;;  %v1890_v0 = vld [vmem:[%s3211_s9 + $0x8] sm:$0xf] }
  0x5d   : > { %2703 = vmatprep.mubr.msk.bf16.mxu1 %vm454_vm5, %v2411_v18  ;;  %v1574_v18 = vsel %vm3390_vm9, %v1572_v2, %v1573_v5  ;;  %v2506_v1 = vrot.slane %v1445_v26, 11  ;;  %v1587_v36 = vrot.slane %v1446_v21, 7  ;;  %v2416_v39 = vcombine.low %v186_v33, %v3322_v40  ;;  %v202_v21 = vld [vmem:[%s3211_s9 + $0x9c] sm:$0xf]  ;;  %v1896_v33 = vld [vmem:[%s3211_s9 + $0x50] sm:$0xf] }
  0x5e   : > { %v2521_v29 = vcombine.low %v1571_v6, %v1574_v18  ;;  %v1586_v35 = vrot.slane %v1584_v25, 4  ;;  %v1591_v43 = vrot.slane %v3515_v24, 7  ;;  %v2417_v44 = vcombine.low %v188_v38, %v3341_v57  ;;  %v198_v6 = vld [vmem:[%s3211_s9 + $0x84] sm:$0xf]  ;;  %v200_v18 = vld [vmem:[%s3211_s9 + $0x90] sm:$0xf] }
  0x5f   : > { %2784 = vmatmul.mubr.msk.bf16.gmra.mrb[12].mxu0 %vm454_vm5, %v2516_v30  ;;  %v2505_v30 = vrot.slane %v1443_v22, 11  ;;  %v2507_v51 = vrot.slane %v1447_v13, 11  ;;  %v1594_v53 = vrot.slane %v1448_v48, 7  ;;  %v2542_v5 = vcombine.low %v3224_v9, %v1890_v0  ;;  %v964_v13 = vld [vmem:[%s3211_s9 + $0x78] sm:$0xc] }
  0x60   : > { %2787 = vmatprep.mubr.msk.bf16.mxu0 %vm454_vm5, %v2517_v31  ;;  %v1579_v31 = vrot.slane %v1577_v16, 4  ;;  %v1593_v52 = vrot.slane %v1591_v43, 4  ;;  %v2420_v54 = vcombine.low %v194_v10, %v3406_v4  ;;  %v2422_v22 = vcombine.low %v198_v6, %v3441_v46  ;;  %v1900_v6 = vld [vmem:[%s3211_s9 + $0x80] sm:$0xf] }
  0x61   : > { %v1578_v8 = vsel %vm3390_vm9, %v2505_v30, %v1577_v16  ;;  %v1592_v61 = vsel %vm3390_vm9, %v2507_v51, %v1591_v43  ;;  %v1892_v16 = vld [vmem:[%s3211_s9 + $0x20] sm:$0xf]  ;;  %v2423_v23 = vcombine.low %v200_v18, %v3463_v15  ;;  %v1898_v51 = vld [vmem:[%s3211_s9 + $0x68] sm:$0xf] }
  0x62   : > { %v1595_v62 = vsel %vm3390_vm9, %v1593_v52, %v1594_v53  ;;  %v2544_v9 = vcombine.low %v3255_v37, %v1892_v16  ;;  %v960_v30 = vld [vmem:[%s3211_s9 + $0x60] sm:$0xc] }
  0x63   : > { %v2524_v2 = vcombine.low %v1592_v61, %v1595_v62 }
  0x64   : > { %2704 = vmatmul.mubr.msk.bf16.vlgmr.msra.gmra.mrb[0].mxu1 %vm454_vm5, %v2412_v41  ;;  %v1581_v41 = vsel %vm3390_vm9, %v1579_v31, %v1580_v32  ;;  %v961_v31 = vld [vmem:[%s3211_s9 + $0x68] sm:$0x3]  ;;  %v1895_v32 = vld [vmem:[%s3211_s9 + $0x44] sm:$0xf] }
  0x65   : > { %2838 = vmatpush3.bf16.msra.mxu1 %v3196_v3  ;;  %2707 = vmatprep.mubr.msk.bf16.mxu1 %vm454_vm5, %v2413_v47  ;;  %v1564_v3 = vsel %vm3390_vm9, %v2503_v60, %v1563_v45  ;;  %v1585_v45 = vsel %vm3390_vm9, %v2506_v1, %v1584_v25  ;;  %v1588_v47 = vsel %vm3390_vm9, %v1586_v35, %v1587_v36  ;;  %v1894_v25 = vld [vmem:[%s3211_s9 + $0x38] sm:$0xf]  ;;  %v2451_v1 = vrot.slane %v960_v30, 10 }
  0x66   : > { %v2520_v27 = vcombine.low %v1564_v3, %v1567_v14  ;;  %v2522_v49 = vcombine.low %v1578_v8, %v1581_v41  ;;  %v2523_v50 = vcombine.low %v1585_v45, %v1588_v47  ;;  %v1891_v3 = vld [vmem:[%s3211_s9 + $0x14] sm:$0xf]  ;;  %v2546_v26 = vcombine.low %v3298_v19, %v1894_v25  ;;  %v962_v45 = vld [vmem:[%s3211_s9 + $0x6c] sm:$0xc] }
  0x67   : > { %2788 = vmatmul.mubr.msk.bf16.gmra.mrb[16].mxu0 %vm454_vm5, %v2518_v55  ;;  %v190_v55 = vld [vmem:[%s3211_s9 + $0x54] sm:$0xf]  ;;  %v1072_v36 = vrot.slane %v961_v31, 6  ;;  %v2547_v38 = vcombine.low %v3322_v40, %v1895_v32  ;;  %v1076_v41 = vrot.slane %v3406_v4, 6  ;;  %v1083_v40 = vrot.slane %v3425_v28, 6 }
  0x68   : > { %2791 = vmatprep.mubr.msk.bf16.mxu0 %vm454_vm5, %v2519_v56  ;;  %v192_v56 = vld [vmem:[%s3211_s9 + $0x60] sm:$0xf]  ;;  %v2418_v60 = vcombine.low %v190_v55, %v3362_v7  ;;  %v206_v8 = vld [vmem:[%s3211_s9 + $0xb4] sm:$0xf]  ;;  %v2452_v52 = vrot.slane %v962_v45, 10  ;;  %v1104_v30 = vrot.slane %v3478_v34, 6 }
  0x69   : > { %v2419_v63 = vcombine.low %v192_v56, %v3378_v42  ;;  %v963_v47 = vld [vmem:[%s3211_s9 + $0x74] sm:$0x3]  ;;  %v2426_v48 = vcombine.low %v206_v8, %v3515_v24  ;;  %v1078_v53 = vrot.slane %v1076_v41, 4  ;;  %v2453_v56 = vrot.slane %v964_v13, 10  ;;  %v971_v32 = vld [vmem:[%s3211_s9 + $0xa4] sm:$0x3] }
  0x6a   : > { %v1079_v55 = vrot.slane %v963_v47, 6  ;;  %v1077_v0 = vsel %vm3229_vm6, %v2452_v52, %v1076_v41  ;;  %v1106_v8 = vrot.slane %v1104_v30, 4  ;;  %v1107_v41 = vrot.slane %v971_v32, 6  ;;  %v1903_v52 = vld [vmem:[%s3211_s9 + $0xa4] sm:$0xf] }
  0x6b   : > { %v1084_v10 = vsel %vm3229_vm6, %v2453_v56, %v1083_v40 }
  0x6c   : > { %2708 = vmatmul.mubr.msk.bf16.gmra.mrb[4].mxu1 %vm454_vm5, %v2414_v11  ;;  %v196_v11 = vld [vmem:[%s3211_s9 + $0x78] sm:$0xf] }
  0x6d   : > { %2711 = vmatprep.mubr.msk.bf16.mxu1 %vm454_vm5, %v2415_v17  ;;  %v2421_v14 = vcombine.low %v196_v11, %v3425_v28  ;;  %v2543_v17 = vcombine.low %v3238_v20, %v1891_v3  ;;  %v1893_v20 = vld [vmem:[%s3211_s9 + $0x2c] sm:$0xf]  ;;  %v966_v11 = vld [vmem:[%s3211_s9 + $0x84] sm:$0xc]  ;;  %v968_v3 = vld [vmem:[%s3211_s9 + $0x90] sm:$0xc] }
  0x6e   : > { %v2545_v37 = vcombine.low %v3275_v58, %v1893_v20  ;;  %v2424_v58 = vcombine.low %v202_v21, %v3478_v34  ;;  %v2454_v18 = vrot.slane %v966_v11, 10  ;;  %v2552_v21 = vcombine.low %v3425_v28, %v1900_v6 }
  0x6f   : > { %2792 = vmatmul.mubr.msk.bf16.gmra.mrb[20].mxu0 %vm454_vm5, %v2520_v27  ;;  %v204_v27 = vld [vmem:[%s3211_s9 + $0xa8] sm:$0xf]  ;;  %v1111_v28 = vrot.slane %v3503_v59, 6 }
  0x70   : > { %2795 = vmatprep.mubr.msk.bf16.mxu0 %vm454_vm5, %v2521_v29  ;;  %v1069_v29 = vrot.slane %v3378_v42, 6  ;;  %v2425_v19 = vcombine.low %v204_v27, %v3503_v59 }
  0x72   : > { %v1071_v35 = vrot.slane %v1069_v29, 4  ;;  %v1070_v43 = vsel %vm3229_vm6, %v2451_v1, %v1069_v29 }
  0x74   : > { %2712 = vmatmul.mubr.msk.bf16.gmra.mrb[8].mxu1 %vm454_vm5, %v2416_v39  ;;  %v2548_v39 = vcombine.low %v3341_v57, %v1896_v33  ;;  %v965_v57 = vld [vmem:[%s3211_s9 + $0x80] sm:$0x3]  ;;  %v973_v33 = vld [vmem:[%s3211_s9 + $0xb0] sm:$0x3] }
  0x75   : > { %2715 = vmatprep.mubr.msk.bf16.mxu1 %vm454_vm5, %v2417_v44  ;;  %v1073_v44 = vsel %vm3229_vm6, %v1071_v35, %v1072_v36  ;;  %v1086_v61 = vrot.slane %v965_v57, 6  ;;  %v1901_v35 = vld [vmem:[%s3211_s9 + $0x8c] sm:$0xf]  ;;  %v1114_v45 = vrot.slane %v973_v33, 6  ;;  %v1108_v57 = vsel %vm3229_vm6, %v1106_v8, %v1107_v41 }
  0x76   : > { %v2553_v47 = vcombine.low %v3441_v46, %v1901_v35 }
  0x77   : > { %2796 = vmatmul.mubr.msk.bf16.gmra.mrb[24].mxu0 %vm454_vm5, %v2522_v49  ;;  %v1897_v49 = vld [vmem:[%s3211_s9 + $0x5c] sm:$0xf] }
  0x78   : > { %2799 = vmatprep.mubr.msk.bf16.mxu0 %vm454_vm5, %v2523_v50  ;;  %v2468_v50 = vcombine.low %v1070_v43, %v1073_v44  ;;  %v2549_v62 = vcombine.low %v3362_v7, %v1897_v49  ;;  %v1113_v44 = vrot.slane %v1111_v28, 4 }
  0x7c   : > { %2716 = vmatmul.mubr.msk.bf16.gmra.mrb[12].mxu1 %vm454_vm5, %v2418_v60  ;;  %v1085_v60 = vrot.slane %v1083_v40, 4 }
  0x7d   : > { %2719 = vmatprep.mubr.msk.bf16.mxu1 %vm454_vm5, %v2419_v63  ;;  %v2550_v63 = vcombine.low %v3378_v42, %v1898_v51  ;;  %v1097_v42 = vrot.slane %v3463_v15, 6  ;;  %v975_v51 = vld [vmem:[%s3211_s9 + $0xbc] sm:$0x3] }
  0x7e   : > { %v1087_v7 = vsel %vm3229_vm6, %v1085_v60, %v1086_v61  ;;  %v1121_v61 = vrot.slane %v975_v51, 6 }
  0x7f   : > { %2800 = vmatmul.mubr.msk.bf16.gmra.mrb[28].mxu0 %vm454_vm5, %v2524_v2  ;;  %v1080_v2 = vsel %vm3229_vm6, %v1078_v53, %v1079_v55  ;;  %v1099_v25 = vrot.slane %v1097_v42, 4  ;;  %v1904_v55 = vld [vmem:[%s3211_s9 + $0xb0] sm:$0xf] }
  0x80   : > { %2805 = vmatprep.mubr.msk.bf16.mxu0 %vm454_vm5, %v2542_v5  ;;  %v1090_v5 = vrot.slane %v3441_v46, 6  ;;  %v2469_v16 = vcombine.low %v1077_v0, %v1080_v2  ;;  %v1115_v46 = vsel %vm3229_vm6, %v1113_v44, %v1114_v45 }
  0x82   : > { %v1091_v27 = vsel %vm3229_vm6, %v2454_v18, %v1090_v5 }
  0x84   : > { %2720 = vmatmul.mubr.msk.bf16.gmra.mrb[16].mxu1 %vm454_vm5, %v2420_v54  ;;  %v967_v54 = vld [vmem:[%s3211_s9 + $0x8c] sm:$0x3] }
  0x85   : > { %2723 = vmatprep.mubr.msk.bf16.mxu1 %vm454_vm5, %v2421_v14  ;;  %v969_v14 = vld [vmem:[%s3211_s9 + $0x98] sm:$0x3]  ;;  %v1093_v20 = vrot.slane %v967_v54, 6 }
  0x87   : > { %2806 = vmatmul.mubr.msk.bf16.vlgmr.msra.gmra.mrb[0].mxu0 %vm454_vm5, %v2543_v17  ;;  %v1899_v17 = vld [vmem:[%s3211_s9 + $0x74] sm:$0xf] }
  0x88   : > { %2809 = vmatprep.mubr.msk.bf16.mxu0 %vm454_vm5, %v2544_v9  ;;  %v2470_v9 = vcombine.low %v1084_v10, %v1087_v7  ;;  %v1905_v10 = vld [vmem:[%s3211_s9 + $0xbc] sm:$0xf] }
  0x8c   : > { %2724 = vmatmul.mubr.msk.bf16.gmra.mrb[20].mxu1 %vm454_vm5, %v2422_v22  ;;  %v1092_v22 = vrot.slane %v1090_v5, 4 }
  0x8d   : > { %2727 = vmatprep.mubr.msk.bf16.mxu1 %vm454_vm5, %v2423_v23  ;;  %v2455_v23 = vrot.slane %v968_v3, 10 }
  0x8e   : > { %v1094_v29 = vsel %vm3229_vm6, %v1092_v22, %v1093_v20 }
  0x8f   : > { %2810 = vmatmul.mubr.msk.bf16.gmra.mrb[4].mxu0 %vm454_vm5, %v2545_v37  ;;  %v1100_v37 = vrot.slane %v969_v14, 6  ;;  %v1098_v31 = vsel %vm3229_vm6, %v2455_v23, %v1097_v42  ;;  %v2471_v1 = vcombine.low %v1091_v27, %v1094_v29 }
  0x90   : > { %2813 = vmatprep.mubr.msk.bf16.mxu0 %vm454_vm5, %v2546_v26  ;;  %v2551_v26 = vcombine.low %v3406_v4, %v1899_v17 }
  0x91   : > { %v1101_v4 = vsel %vm3229_vm6, %v1099_v25, %v1100_v37 }
  0x92   : > { %v2472_v36 = vcombine.low %v1098_v31, %v1101_v4 }
  0x94   : > { %2728 = vmatmul.mubr.msk.bf16.gmra.mrb[24].mxu1 %vm454_vm5, %v2424_v58  ;;  %v970_v58 = vld [vmem:[%s3211_s9 + $0x9c] sm:$0xc] }
  0x95   : > { %2731 = vmatprep.mubr.msk.bf16.mxu1 %vm454_vm5, %v2425_v19  ;;  %v972_v19 = vld [vmem:[%s3211_s9 + $0xa8] sm:$0xc] }
  0x96   : > { %v2457_v43 = vrot.slane %v972_v19, 10 }
  0x97   : > { %2814 = vmatmul.mubr.msk.bf16.gmra.mrb[8].mxu0 %vm454_vm5, %v2547_v38  ;;  %v1902_v38 = vld [vmem:[%s3211_s9 + $0x98] sm:$0xf] }
  0x98   : > { %2817 = vmatprep.mubr.msk.bf16.mxu0 %vm454_vm5, %v2548_v39  ;;  %v2456_v39 = vrot.slane %v970_v58, 10  ;;  %v2554_v40 = vcombine.low %v3463_v15, %v1902_v38  ;;  %v1112_v49 = vsel %vm3229_vm6, %v2457_v43, %v1111_v28 }
  0x99   : > { %v2474_v53 = vcombine.low %v1112_v49, %v1115_v46 }
  0x9a   : > { %v1105_v13 = vsel %vm3229_vm6, %v2456_v39, %v1104_v30 }
  0x9b   : > { %v2473_v15 = vcombine.low %v1105_v13, %v1108_v57 }
  0x9c   : > { %2732 = vmatmul.mubr.msk.bf16.gmra.mrb[28].mxu1 %vm454_vm5, %v2426_v48  ;;  %v1118_v48 = vrot.slane %v3515_v24, 6 }
  0x9d   : > { %2753 = vmatprep.mubr.msk.bf16.mxu1 %vm454_vm5, %v2468_v50  ;;  %v974_v50 = vld [vmem:[%s3211_s9 + $0xb4] sm:$0xc] }
  0x9e   : > { %v2458_v56 = vrot.slane %v974_v50, 10  ;;  %v1120_v60 = vrot.slane %v1118_v48, 4 }
  0x9f   : > { %2818 = vmatmul.mubr.msk.bf16.gmra.mrb[12].mxu0 %vm454_vm5, %v2549_v62  ;;  %v2555_v62 = vcombine.low %v3478_v34, %v1903_v52  ;;  %v2557_v34 = vcombine.low %v3515_v24, %v1905_v10 }
  0xa0   : > { %2821 = vmatprep.mubr.msk.bf16.mxu0 %vm454_vm5, %v2550_v63  ;;  %v2556_v63 = vcombine.low %v3503_v59, %v1904_v55  ;;  %v1119_v0 = vsel %vm3229_vm6, %v2458_v56, %v1118_v48  ;;  %v1122_v2 = vsel %vm3229_vm6, %v1120_v60, %v1121_v61  ;;  %v3112_v59 = vmov 0  }
  0xa1   : > { %v2475_v5 = vcombine.low %v1119_v0, %v1122_v2  ;;  %3014 = vset.pattern.permute.xlu1 %v3112_v59 }
  0xa2   : > { %2267 = vperm.xlu1 %3014, %v2264_v12  }
  0xa4   : > { %2754 = vmatmul.mubr.msk.bf16.vlgmr.msra.gmra.mrb[16].mxu1 %vm454_vm5, %v2469_v16 }
  0xa5   : > { %2757 = vmatprep.mubr.msk.bf16.mxu1 %vm454_vm5, %v2470_v9 }
  0xa7   : > { %2822 = vmatmul.mubr.msk.bf16.gmra.mrb[16].mxu0 %vm454_vm5, %v2551_v26 }
  0xa8   : > { %2825 = vmatprep.mubr.msk.bf16.mxu0 %vm454_vm5, %v2552_v21 }
  0xac   : > { %2758 = vmatmul.mubr.msk.bf16.gmra.mrb[20].mxu1 %vm454_vm5, %v2471_v1 }
  0xad   : > { %2761 = vmatprep.mubr.msk.bf16.mxu1 %vm454_vm5, %v2472_v36 }
  0xaf   : > { %2826 = vmatmul.mubr.msk.bf16.gmra.mrb[20].mxu0 %vm454_vm5, %v2553_v47 }
  0xb0   : > { %2829 = vmatprep.mubr.msk.bf16.mxu0 %vm454_vm5, %v2554_v40 }
  0xb4   : > { %2762 = vmatmul.mubr.msk.bf16.gmra.mrb[24].mxu1 %vm454_vm5, %v2473_v15 }
  0xb5   : > { %2765 = vmatprep.mubr.msk.bf16.mxu1 %vm454_vm5, %v2474_v53 }
  0xb7   : > { %2830 = vmatmul.mubr.msk.bf16.gmra.mrb[24].mxu0 %vm454_vm5, %v2555_v62 }
  0xb8   : > { %2833 = vmatprep.mubr.msk.bf16.mxu0 %vm454_vm5, %v2556_v63 }
  0xbc   : > { %2766 = vmatmul.mubr.msk.bf16.gmra.mrb[28].mxu1 %vm454_vm5, %v2475_v5 }
  0xbf   : > { %2834 = vmatmul.mubr.msk.bf16.gmra.mrb[28].mxu0 %vm454_vm5, %v2557_v34 }
 0x137   : > { %v2705_v7 = vpop.f32.mrb[0].mxu1 }
 0x138   : > { %v817_v11 = vpop.f32.mrb[1].mxu1 }
 0x139   : > { %v2706_v54 = vpop.f32.mrb[2].mxu1 }
 0x13a   : > { %v820_v42 = vpop.f32.mrb[3].mxu1 }
 0x13f   : > { %v2709_v3 = vpop.f32.mrb[4].mxu1 }
 0x140   : > { %v833_v14 = vpop.f32.mrb[5].mxu1 }
 0x141   : > { %v2710_v16 = vpop.f32.mrb[6].mxu1 }
 0x142   : > { %v836_v24 = vpop.f32.mrb[7].mxu1 }
 0x147   : > { %v2713_v17 = vpop.f32.mrb[8].mxu1 }
 0x148   : > { %v849_v9 = vpop.f32.mrb[9].mxu1 }
 0x149   : > { %v2714_v6 = vpop.f32.mrb[10].mxu1 }
 0x14a   : > { %v852_v18 = vpop.f32.mrb[11].mxu1 }
 0x14f   : > { %v2717_v22 = vpop.f32.mrb[12].mxu1 }
 0x150   : > { %v865_v20 = vpop.f32.mrb[13].mxu1 }
 0x151   : > { %v2718_v23 = vpop.f32.mrb[14].mxu1 }
 0x152   : > { %v868_v25 = vpop.f32.mrb[15].mxu1 }
 0x15a   : > { %v2807_v37 = vpop.f32.mrb[0].mxu0 }
 0x15b   : > { %v2839_v26 = vadd.f32 %v2807_v37, %v2705_v7  ;;  %v2041_v21 = vpop.f32.mrb[1].mxu0 }
 0x15c   : > { %v2808_v27 = vpop.f32.mrb[2].mxu0  ;;  %v2840_v29 = vadd.f32 %v2041_v21, %v817_v11 }
 0x15d   : > { %v2841_v30 = vadd.f32 %v2808_v27, %v2706_v54  ;;  %v2044_v31 = vpop.f32.mrb[3].mxu0 }
 0x15e   : > { %v2842_v4 = vadd.f32 %v2044_v31, %v820_v42  ;;  %2200 = vxpose.xlu0.b32.start [1/16] (narrow) %v2840_v29, 8 }
 0x162   : > { %v2811_v58 = vpop.f32.mrb[4].mxu0  ;;  %2201 = vxpose.xlu0.b32.cont [2/16] (narrow) %v2842_v4, 8 }
 0x163   : > { %v2843_v32 = vadd.f32 %v2811_v58, %v2709_v3  ;;  %v2057_v28 = vpop.f32.mrb[5].mxu0 }
 0x164   : > { %v2844_v19 = vadd.f32 %v2057_v28, %v833_v14  ;;  %v2812_v33 = vpop.f32.mrb[6].mxu0 }
 0x165   : > { %v2845_v1 = vadd.f32 %v2812_v33, %v2710_v16  ;;  %v2060_v35 = vpop.f32.mrb[7].mxu0 }
 0x166   : > { %v2846_v36 = vadd.f32 %v2060_v35, %v836_v24  ;;  %2202 = vxpose.xlu0.b32.cont [3/16] (narrow) %v2839_v26, 8 }
 0x16a   : > { %v2815_v38 = vpop.f32.mrb[8].mxu0  ;;  %2203 = vxpose.xlu0.b32.cont [4/16] (narrow) %v2841_v30, 8 }
 0x16b   : > { %v2847_v39 = vadd.f32 %v2815_v38, %v2713_v17  ;;  %v2073_v8 = vpop.f32.mrb[9].mxu0 }
 0x16c   : > { %v2848_v41 = vadd.f32 %v2073_v8, %v849_v9  ;;  %v2816_v43 = vpop.f32.mrb[10].mxu0 }
 0x16d   : > { %v2849_v44 = vadd.f32 %v2816_v43, %v2714_v6  ;;  %v2076_v45 = vpop.f32.mrb[11].mxu0 }
 0x16e   : > { %v2850_v47 = vadd.f32 %v2076_v45, %v852_v18  ;;  %2204 = vxpose.xlu0.b32.cont [5/16] (narrow) %v2844_v19, 8 }
 0x172   : > { %v2819_v40 = vpop.f32.mrb[12].mxu0  ;;  %2205 = vxpose.xlu0.b32.cont [6/16] (narrow) %v2846_v36, 8 }
 0x173   : > { %v3784_v13 = vadd.f32 %v2819_v40, %v2717_v22  ;;  %v2089_v57 = vpop.f32.mrb[13].mxu0 }
 0x174   : > { %v2852_v48 = vadd.f32 %v2089_v57, %v865_v20  ;;  %v2820_v49 = vpop.f32.mrb[14].mxu0 }
 0x175   : > { %v3786_v46 = vadd.f32 %v2820_v49, %v2718_v23  ;;  %v2092_v50 = vpop.f32.mrb[15].mxu0 }
 0x176   : > { %v2854_v51 = vadd.f32 %v2092_v50, %v868_v25  ;;  %2206 = vxpose.xlu0.b32.cont [7/16] (narrow) %v2843_v32, 8 }
 0x177   : > { %v2755_v15 = vpop.f32.mrb[16].mxu1 }
 0x178   : > { %v1322_v52 = vpop.f32.mrb[17].mxu1 }
 0x179   : > { %v2756_v53 = vpop.f32.mrb[18].mxu1 }
 0x17a   : > { %v2823_v55 = vpop.f32.mrb[16].mxu0  ;;  %2207 = vxpose.xlu0.b32.cont [8/16] (narrow) %v2845_v1, 8  ;;  %v1325_v56 = vpop.f32.mrb[19].mxu1 }
 0x17b   : > { %v2855_v60 = vadd.f32 %v2823_v55, %v2755_v15  ;;  %v2105_v61 = vpop.f32.mrb[17].mxu0 }
 0x17c   : > { %v2856_v62 = vadd.f32 %v2105_v61, %v1322_v52  ;;  %v2824_v63 = vpop.f32.mrb[18].mxu0 }
 0x17d   : > { %v2857_v0 = vadd.f32 %v2824_v63, %v2756_v53  ;;  %v2108_v2 = vpop.f32.mrb[19].mxu0 }
 0x17e   : > { %v2858_v5 = vadd.f32 %v2108_v2, %v1325_v56  ;;  %2208 = vxpose.xlu0.b32.cont [9/16] (narrow) %v2848_v41, 8  ;;  %2232 = vxpose.xlu1.b32.start [1/16] (narrow) %v2856_v62, 8 }
 0x17f   : > { %v2759_v10 = vpop.f32.mrb[20].mxu1 }
 0x180   : > { %v1338_v34 = vpop.f32.mrb[21].mxu1 }
 0x181   : > { %v2760_v12 = vpop.f32.mrb[22].mxu1 }
 0x182   : > { %v2827_v7 = vpop.f32.mrb[20].mxu0  ;;  %2209 = vxpose.xlu0.b32.cont [10/16] (narrow) %v2850_v47, 8  ;;  %2233 = vxpose.xlu1.b32.cont [2/16] (narrow) %v2858_v5, 8  ;;  %v1341_v11 = vpop.f32.mrb[23].mxu1 }
 0x183   : > { %v2859_v54 = vadd.f32 %v2827_v7, %v2759_v10  ;;  %v2121_v42 = vpop.f32.mrb[21].mxu0 }
 0x184   : > { %v2860_v3 = vadd.f32 %v2121_v42, %v1338_v34  ;;  %v2828_v14 = vpop.f32.mrb[22].mxu0 }
 0x185   : > { %v2861_v16 = vadd.f32 %v2828_v14, %v2760_v12  ;;  %v2124_v24 = vpop.f32.mrb[23].mxu0 }
 0x186   : > { %v2862_v17 = vadd.f32 %v2124_v24, %v1341_v11  ;;  %2210 = vxpose.xlu0.b32.cont [11/16] (narrow) %v2847_v39, 8  ;;  %2234 = vxpose.xlu1.b32.cont [3/16] (narrow) %v2855_v60, 8  ;;  %v2268_v39 = vpop.permute.xlu1 %2267 }
 0x187   : > { %v2763_v9 = vpop.f32.mrb[24].mxu1 }
 0x188   : > { %v1354_v6 = vpop.f32.mrb[25].mxu1 }
 0x189   : > { %v2764_v18 = vpop.f32.mrb[26].mxu1 }
 0x18a   : > { %v2831_v22 = vpop.f32.mrb[24].mxu0  ;;  %2211 = vxpose.xlu0.b32.cont [12/16] (narrow) %v2849_v44, 8  ;;  %2235 = vxpose.xlu1.b32.cont [4/16] (narrow) %v2857_v0, 8  ;;  %v1357_v20 = vpop.f32.mrb[27].mxu1 }
 0x18b   : > { %v2863_v23 = vadd.f32 %v2831_v22, %v2763_v9  ;;  %v2137_v25 = vpop.f32.mrb[25].mxu0 }
 0x18c   : > { %v2864_v37 = vadd.f32 %v2137_v25, %v1354_v6  ;;  %v2832_v26 = vpop.f32.mrb[26].mxu0 }
 0x18d   : > { %v2865_v21 = vadd.f32 %v2832_v26, %v2764_v18  ;;  %v2140_v27 = vpop.f32.mrb[27].mxu0 }
 0x18e   : > { %v2866_v29 = vadd.f32 %v2140_v27, %v1357_v20  ;;  %2212 = vxpose.xlu0.b32.cont [13/16] (narrow) %v2852_v48, 8  ;;  %2236 = vxpose.xlu1.b32.cont [5/16] (narrow) %v2860_v3, 8 }
 0x18f   : > { %v2767_v30 = vpop.f32.mrb[28].mxu1 }
 0x190   : > { %v1370_v31 = vpop.f32.mrb[29].mxu1 }
 0x191   : > { %v2768_v4 = vpop.f32.mrb[30].mxu1 }
 0x192   : > { %v2835_v58 = vpop.f32.mrb[28].mxu0  ;;  %2213 = vxpose.xlu0.b32.cont [14/16] (narrow) %v2854_v51, 8  ;;  %2237 = vxpose.xlu1.b32.cont [6/16] (narrow) %v2862_v17, 8  ;;  %v1373_v32 = vpop.f32.mrb[31].mxu1 }
 0x193   : > { %v2867_v28 = vadd.f32 %v2835_v58, %v2767_v30  ;;  %v2153_v19 = vpop.f32.mrb[29].mxu0 }
 0x194   : > { %v2868_v33 = vadd.f32 %v2153_v19, %v1370_v31  ;;  %v2836_v1 = vpop.f32.mrb[30].mxu0 }
 0x195   : > { %v2869_v35 = vadd.f32 %v2836_v1, %v2768_v4  ;;  %v2156_v36 = vpop.f32.mrb[31].mxu0 }
 0x196   : > { %v2870_v38 = vadd.f32 %v2156_v36, %v1373_v32  ;;  %2214 = vxpose.xlu0.b32.cont [15/16] (narrow) %v3784_v13, 8  ;;  %2238 = vxpose.xlu1.b32.cont [7/16] (narrow) %v2859_v54, 8 }
 0x19a   : > { %2215 = vxpose.xlu0.b32.end [16/16] (narrow) %v3786_v46, 8  ;;  %2239 = vxpose.xlu1.b32.cont [8/16] (narrow) %v2861_v16, 8 }
 0x19e   : > { %2240 = vxpose.xlu1.b32.cont [9/16] (narrow) %v2864_v37, 8 }
 0x1a2   : > { %2241 = vxpose.xlu1.b32.cont [10/16] (narrow) %v2866_v29, 8 }
 0x1a6   : > { %2242 = vxpose.xlu1.b32.cont [11/16] (narrow) %v2863_v23, 8 }
 0x1aa   : > { %2243 = vxpose.xlu1.b32.cont [12/16] (narrow) %v2865_v21, 8 }
 0x1ae   : > { %2244 = vxpose.xlu1.b32.cont [13/16] (narrow) %v2868_v33, 8 }
 0x1b2   : > { %2245 = vxpose.xlu1.b32.cont [14/16] (narrow) %v2870_v38, 8 }
 0x1b6   : > { %2246 = vxpose.xlu1.b32.cont [15/16] (narrow) %v2867_v28, 8 }
 0x1ba   : > { %2247 = vxpose.xlu1.b32.end [16/16] (narrow) %v2869_v35, 8 }
 0x1c3   : > { %3015 = vset.pattern.permute.xlu0 %v3112_v59 }
 0x1de   : > { %v2216_v8 = vpop.trf.xlu0 }
 0x1df   : > { %v2270_v43 = vadd.f32 %v2268_v39, %v2216_v8 }
 0x1fe   : > { %v2248_v41 = vpop.trf.xlu1 }
 0x1ff   : > { %v2271_v44 = vadd.f32 %v2268_v39, %v2248_v41 }
 0x201   : > { %v2580_v45 = vpack.c.bf16 %v2271_v44, %v2270_v43 }
 0x203   : > { %2280 = vst [vmem:[%s166_s26] sm:$0xff] %v2580_v45 }
 0x204   : > { %3061 = shalt.err (!%p3058_p3)
}
 0x205   : > { %s3062_s8 = scalar_lea.hbm %s3796_s30, 128  ;;  %s3066_s11 = scalar_lea.hbm %s3841_s3, 256 }
 0x206   : > { %p3063_p4 = scmp.ne.s32.totalorder %s3796_s30, %s3062_s8  ;;  %p3067_p9 = scmp.lt.u32.totalorder %s3796_s30, %s3841_s3 }
 0x207   : > { %p3068_p10 = scmp.lt.u32.totalorder %s3066_s11, %s3062_s8  ;;  %p3070_p12 = scmp.lt.u32.totalorder %s3062_s8, %s3796_s30 }
 0x208   : > { %p3064_p7 = pnand %p3063_p4, %p3172_p5 }
 0x209   : > { %p3069_p11 = por %p3068_p10, %p3067_p9 }
 0x20a   : > { %p3065_p8 = pneg %p3064_p7 }
 0x20b   : > { %p3071_p13 = por %p3070_p12, %p3069_p11 }
 0x20d   : > { %p3072_p0 = pnand %p3071_p13, %p3065_p8 }
 0x20f   : > { %3075 = shalt.err (!%p3072_p0)
}
 0x210   : > { %2974 = dma.vmem_to_hbm [thread:$0]  (%p3172_p5), %s3798_s27, 128, %s3796_s30, %s2282_s4  }
 0x211 PF: > { %p2980_p1 = scmp.ge.s32.totalorder %s3110_s15, 2  ;;  %s2308_s20 = sand.u32 1, %s3098_s12  }
 0x212   : > { %s2309_s24 = scalar_lea.sflag [#allocation3], %s2308_s20 }
 0x213   : > { %p2977_p2 = pnand %p2980_p1, %p3176_p6 }
 0x215   : > { %3093 = dma.done.wait (!%p2977_p2), %s2309_s24, 128  }
 0x216   : > { %3095 = vsyncadd (!%p2977_p2), %s2309_s24, 4294967168  ;;  %p13_p3 = scmp.ge.s32.totalorder %s3159_s18, 4   ;;  %s3850_s12 = smov %s3102_s13 }
 0x217   : > { %s3851_s13 = smov %s3106_s14  ;;  %s3852_s14 = smov %s3170_s21 }
 0x218   : > { %s3853_s15 = smov %s3159_s18  ;;  %15 = sbr.rel (!%p13_p3) target bundleno = 3 (0x3), region = 71 }
 0x21f   :  { %2314 = vsyncpa [#allocation3], 1 }
 0x220   :  { %2316 = vsyncpa [#allocation3 + $0x1], 1 }

</bundles_post_ra>
